<compile_context>
chip_gen: v6e
topology: v6e:2x2x1
jax: 0.10.0
libtpu: 0.0.40
codegen_flags: <defaults>
</compile_context>

<pallas_src>
import math

import numpy as np
import jax
import jax.numpy as jnp
from jax.experimental import pallas as pl
from jax.experimental.pallas import tpu as pltpu

WINDOW_SIZE = 11
SIGMA = 1.5
C1 = 0.01 ** 2
C2 = 0.03 ** 2
PAD = WINDOW_SIZE // 2  # vertical halo baked into the image inputs


def _gaussian_1d(window_size, sigma):
    g = np.array(
        [math.exp(-((x - window_size // 2) ** 2) / (2.0 * sigma ** 2))
         for x in range(window_size)],
        dtype=np.float64,
    )
    return (g / g.sum()).astype(np.float32)


_GAUSS_TAPS = tuple(float(t) for t in _gaussian_1d(WINDOW_SIZE, SIGMA))


def _band_right(size, taps, center):
    """M such that (img @ M)[:, w] == sum_k taps[k] * img[:, w + k - center]
    ('same' cross-correlation with zero padding along the lane axis)."""
    taps = np.asarray(taps, dtype=np.float32)
    m = np.zeros((size, size), dtype=np.float32)
    for k in range(len(taps)):
        off = k - center
        for w in range(size):
            j = w + off
            if 0 <= j < size:
                m[j, w] = taps[k]
    return m


def _kernel(a_ref, b_ref, f_ref, gw_ref, hx_ref, hy_ref, out_ref):
    _, Hpad, W = a_ref.shape
    H = Hpad - 2 * PAD

    Ap = a_ref[0]          # (H + 2*PAD, W) f32, vertically zero-padded
    Bp = b_ref[0]
    Fp = f_ref[0]
    GW = gw_ref[...]       # (W, W) f32  Gaussian band (horizontal pass)
    Hx = hx_ref[...]       # (W, W) bf16 Sobel-x horizontal diff   [-1, 0, 1]
    Hy = hy_ref[...]       # (W, W) bf16 Sobel-y horizontal smooth [ 1, 2, 1]

    def vconv(xp, taps, center):
        # 'same' vertical (sublane) cross-correlation; the zero padding is
        # already baked into xp (PAD rows each side). Pure VPU shift/add.
        base = PAD - center
        acc = None
        for k, t in enumerate(taps):
            if t == 0.0:
                continue
            term = t * xp[:, base + k: base + k + H, :]
            acc = term if acc is None else acc + term
        return acc                                           # (K, H, W)

    # ---------------- Gaussian / SSIM path (f32) ----------------
    ops = jnp.concatenate(
        [Fp[None], (Fp * Fp)[None],
         Ap[None], (Ap * Ap)[None], (Ap * Fp)[None],
         Bp[None], (Bp * Bp)[None], (Bp * Fp)[None]],
        axis=0)                                              # (8, H+2P, W)
    vert = vconv(ops, _GAUSS_TAPS, PAD)                      # (8, H, W)
    horiz = jnp.dot(vert.reshape(8 * H, W), GW,
                    preferred_element_type=jnp.float32).reshape(8, H, W)
    mu_f, e_ff = horiz[0], horiz[1]
    mu_a, e_aa, e_af = horiz[2], horiz[3], horiz[4]
    mu_b, e_bb, e_bf = horiz[5], horiz[6], horiz[7]
    sigma_f = e_ff - mu_f * mu_f     # only mu_f / sigma_f stay live below

    def ssim_map(mu1, e11, e1f):
        mu1_sq = mu1 * mu1
        mu1_muf = mu1 * mu_f
        sigma1 = e11 - mu1_sq
        sigma1f = e1f - mu1_muf
        num = (2.0 * mu1_muf + C1) * (2.0 * sigma1f + C2)
        den = (mu1_sq + mu_f * mu_f + C1) * (sigma1 + sigma_f + C2)
        return num / den

    ssim_af = ssim_map(mu_a, e_aa, e_af)                     # (H, W)
    ssim_bf = ssim_map(mu_b, e_bb, e_bf)

    # ---------------- Sobel gradient path (bf16 matmuls) ----------------
    imgs = jnp.concatenate([Ap[None], Bp[None]], axis=0)     # (2, H+2P, W)
    smooth_v = vconv(imgs, (1.0, 2.0, 1.0), 1)               # Kx vertical [1,2,1]
    diff_v = vconv(imgs, (1.0, 0.0, -1.0), 1)                # Ky vertical [1,0,-1]
    gx = jnp.dot(smooth_v.reshape(2 * H, W).astype(jnp.bfloat16), Hx,
                 preferred_element_type=jnp.float32).reshape(2, H, W)
    gy = jnp.dot(diff_v.reshape(2 * H, W).astype(jnp.bfloat16), Hy,
                 preferred_element_type=jnp.float32).reshape(2, H, W)
    grad = jnp.abs(gx) + jnp.abs(gy)                         # (2, H, W)

    # ---------------- per-image sublane-partial sums ----------------
    out_ref[0, 0:1, :] = jnp.sum(grad[0], axis=0, keepdims=True)
    out_ref[0, 1:2, :] = jnp.sum(grad[1], axis=0, keepdims=True)
    out_ref[0, 2:3, :] = jnp.sum(ssim_af, axis=0, keepdims=True)
    out_ref[0, 3:4, :] = jnp.sum(ssim_bf, axis=0, keepdims=True)


def l_ssim(image_A, image_B, image_fused):
    """Pallas implementation of L_SSIM.forward. Inputs: (N, 1, H, W)."""
    N, C, H, W = image_A.shape
    assert C == 1, "Sobelxy weight is (1,1,3,3): single-channel inputs only"
    pad = ((0, 0), (PAD, PAD), (0, 0))
    a = jnp.pad(image_A[:, 0].astype(jnp.float32), pad)
    b = jnp.pad(image_B[:, 0].astype(jnp.float32), pad)
    f = jnp.pad(image_fused[:, 0].astype(jnp.float32), pad)
    Hp = H + 2 * PAD

    # Constant band matrices for the horizontal ('lane') passes only.
    g = _gaussian_1d(WINDOW_SIZE, SIGMA)
    GW = jnp.asarray(_band_right(W, g, PAD))                                 # f32
    Hx = jnp.asarray(_band_right(W, [-1.0, 0.0, 1.0], 1)).astype(jnp.bfloat16)
    Hy = jnp.asarray(_band_right(W, [1.0, 2.0, 1.0], 1)).astype(jnp.bfloat16)

    img_block = lambda: pl.BlockSpec((1, Hp, W), lambda n: (n, 0, 0))
    wmat_block = lambda: pl.BlockSpec((W, W), lambda n: (0, 0))

    # 1 (8H,W)@(W,W) f32 + 2 (2H,W)@(W,W) bf16 matmuls per image + VPU taps.
    flops = int(N * (24 * H * W * W + 250 * H * W))
    transcendentals = int(2 * N * H * W)       # two ssim_map divisions / image
    bytes_accessed = int(4 * (3 * N * Hp * W + W * W + N * 4 * W) + 2 * 2 * W * W)

    out = pl.pallas_call(
        _kernel,
        out_shape=jax.ShapeDtypeStruct((N, 4, W), jnp.float32),
        grid_spec=pltpu.PrefetchScalarGridSpec(
            num_scalar_prefetch=0,
            grid=(N,),
            in_specs=[
                img_block(), img_block(), img_block(),   # A, B, F (padded)
                wmat_block(), wmat_block(), wmat_block() # GW, Hx, Hy
            ],
            out_specs=pl.BlockSpec((1, 4, W), lambda n: (n, 0, 0)),
        ),
        compiler_params=pltpu.CompilerParams(
            dimension_semantics=("parallel",),
        ),
        cost_estimate=pl.CostEstimate(
            flops=flops,
            transcendentals=transcendentals,
            bytes_accessed=bytes_accessed,
        ),
    )(a, b, f, GW, Hx, Hy)

    # Tiny final scalar math in JAX (cross-lane reduce of the partial sums,
    # means, fusion weights, weighted sum).
    totals = jnp.sum(out, axis=(0, 2))         # (4,)
    npix = jnp.float32(N * H * W)
    mean_grad_a = totals[0] / npix
    mean_grad_b = totals[1] / npix
    # NOTE: matches the PyTorch reference exactly; denom == 0 (NaN weights)
    # for gradient-free constant inputs — same hazard as the reference.
    denom = mean_grad_a + mean_grad_b
    weight_a = mean_grad_a / denom
    weight_b = mean_grad_b / denom
    ssim_af = totals[2] / npix
    ssim_bf = totals[3] / npix
    return weight_a * ssim_af + weight_b * ssim_bf


if __name__ == "__main__":
    key = jax.random.PRNGKey(0)
    k_a, k_b, k_f = jax.random.split(key, 3)
    shape = (2, 1, 16, 16)  # N, C=1, H, W
    image_A = jax.random.uniform(k_a, shape, dtype=jnp.float32)
    image_B = jax.random.uniform(k_b, shape, dtype=jnp.float32)
    image_F = jax.random.uniform(k_f, shape, dtype=jnp.float32)

    loss = jax.block_until_ready(jax.jit(l_ssim)(image_A, image_B, image_F))
    assert loss.shape == () and bool(jnp.isfinite(loss))
    print("KERNEL_OK")
</pallas_src>

<mosaic_0001>
module attributes {stable_mosaic.version = 11 : i64} {
  func.func @_kernel(%arg0: i32, %arg1: memref<1x26x16xf32, #tpu.memory_space<vmem>>, %arg2: memref<1x26x16xf32, #tpu.memory_space<vmem>>, %arg3: memref<1x26x16xf32, #tpu.memory_space<vmem>>, %arg4: memref<16x16xf32, #tpu.memory_space<vmem>>, %arg5: memref<16x16xbf16, #tpu.memory_space<vmem>>, %arg6: memref<16x16xbf16, #tpu.memory_space<vmem>>, %arg7: memref<1x4x16xf32, #tpu.memory_space<vmem>>) attributes {dimension_semantics = [#tpu.dimension_semantics<parallel>], iteration_bounds = array<i64: 2>, scalar_prefetch = 0 : i64, scratch_operands = 0 : i64, tpu.core_type = #tpu.core_type<tc>, window_params = [{transform_indices = @transform_0, window_bounds = array<i64: 1, 26, 16>}, {transform_indices = @transform_1, window_bounds = array<i64: 1, 26, 16>}, {transform_indices = @transform_2, window_bounds = array<i64: 1, 26, 16>}, {pipeline_mode = #tpu.pipeline_mode<synchronous>, transform_indices = @transform_3, window_bounds = array<i64: 16, 16>}, {pipeline_mode = #tpu.pipeline_mode<synchronous>, transform_indices = @transform_4, window_bounds = array<i64: 16, 16>}, {pipeline_mode = #tpu.pipeline_mode<synchronous>, transform_indices = @transform_5, window_bounds = array<i64: 16, 16>}, {transform_indices = @transform_6, window_bounds = array<i64: 1, 4, 16>}]} {
    %c0 = arith.constant 0 : index
    %c0_0 = arith.constant 0 : index
    %c0_1 = arith.constant 0 : index
    %0 = vector.load %arg1[%c0, %c0_0, %c0_1] : memref<1x26x16xf32, #tpu.memory_space<vmem>>, vector<1x26x16xf32>
    %1 = vector.shape_cast %0 : vector<1x26x16xf32> to vector<26x16xf32>
    %c0_2 = arith.constant 0 : index
    %c0_3 = arith.constant 0 : index
    %c0_4 = arith.constant 0 : index
    %2 = vector.load %arg2[%c0_2, %c0_3, %c0_4] : memref<1x26x16xf32, #tpu.memory_space<vmem>>, vector<1x26x16xf32>
    %3 = vector.shape_cast %2 : vector<1x26x16xf32> to vector<26x16xf32>
    %c0_5 = arith.constant 0 : index
    %c0_6 = arith.constant 0 : index
    %c0_7 = arith.constant 0 : index
    %4 = vector.load %arg3[%c0_5, %c0_6, %c0_7] : memref<1x26x16xf32, #tpu.memory_space<vmem>>, vector<1x26x16xf32>
    %5 = vector.shape_cast %4 : vector<1x26x16xf32> to vector<26x16xf32>
    %c0_8 = arith.constant 0 : index
    %c0_9 = arith.constant 0 : index
    %6 = vector.load %arg4[%c0_8, %c0_9] : memref<16x16xf32, #tpu.memory_space<vmem>>, vector<16x16xf32>
    %c0_10 = arith.constant 0 : index
    %c0_11 = arith.constant 0 : index
    %7 = vector.load %arg5[%c0_10, %c0_11] : memref<16x16xbf16, #tpu.memory_space<vmem>>, vector<16x16xbf16>
    %c0_12 = arith.constant 0 : index
    %c0_13 = arith.constant 0 : index
    %8 = vector.load %arg6[%c0_12, %c0_13] : memref<16x16xbf16, #tpu.memory_space<vmem>>, vector<16x16xbf16>
    %9 = vector.shape_cast %5 : vector<26x16xf32> to vector<1x26x16xf32>
    %10 = arith.mulf %5, %5 : vector<26x16xf32>
    %11 = vector.shape_cast %10 : vector<26x16xf32> to vector<1x26x16xf32>
    %12 = vector.shape_cast %1 : vector<26x16xf32> to vector<1x26x16xf32>
    %13 = arith.mulf %1, %1 : vector<26x16xf32>
    %14 = vector.shape_cast %13 : vector<26x16xf32> to vector<1x26x16xf32>
    %15 = arith.mulf %1, %5 : vector<26x16xf32>
    %16 = vector.shape_cast %15 : vector<26x16xf32> to vector<1x26x16xf32>
    %17 = vector.shape_cast %3 : vector<26x16xf32> to vector<1x26x16xf32>
    %18 = arith.mulf %3, %3 : vector<26x16xf32>
    %19 = vector.shape_cast %18 : vector<26x16xf32> to vector<1x26x16xf32>
    %20 = arith.mulf %3, %5 : vector<26x16xf32>
    %21 = vector.shape_cast %20 : vector<26x16xf32> to vector<1x26x16xf32>
    %22 = tpu.concatenate %9, %11, %12, %14, %16, %17, %19, %21 in 0 : vector<1x26x16xf32>, vector<1x26x16xf32>, vector<1x26x16xf32>, vector<1x26x16xf32>, vector<1x26x16xf32>, vector<1x26x16xf32>, vector<1x26x16xf32>, vector<1x26x16xf32> -> vector<8x26x16xf32>
    %23 = vector.extract_strided_slice %22 {offsets = [0, 0, 0], sizes = [8, 16, 16], strides = [1, 1, 1]} : vector<8x26x16xf32> to vector<8x16x16xf32>
    %cst = arith.constant 0.00102838012 : f32
    %24 = vector.broadcast %cst : f32 to vector<8x16x16xf32>
    %25 = arith.mulf %24, %23 : vector<8x16x16xf32>
    %26 = vector.extract_strided_slice %22 {offsets = [0, 1, 0], sizes = [8, 16, 16], strides = [1, 1, 1]} : vector<8x26x16xf32> to vector<8x16x16xf32>
    %cst_14 = arith.constant 0.00759875821 : f32
    %27 = vector.broadcast %cst_14 : f32 to vector<8x16x16xf32>
    %28 = arith.mulf %27, %26 : vector<8x16x16xf32>
    %29 = arith.addf %25, %28 : vector<8x16x16xf32>
    %30 = vector.extract_strided_slice %22 {offsets = [0, 2, 0], sizes = [8, 16, 16], strides = [1, 1, 1]} : vector<8x26x16xf32> to vector<8x16x16xf32>
    %cst_15 = arith.constant 0.0360007733 : f32
    %31 = vector.broadcast %cst_15 : f32 to vector<8x16x16xf32>
    %32 = arith.mulf %31, %30 : vector<8x16x16xf32>
    %33 = arith.addf %29, %32 : vector<8x16x16xf32>
    %34 = vector.extract_strided_slice %22 {offsets = [0, 3, 0], sizes = [8, 16, 16], strides = [1, 1, 1]} : vector<8x26x16xf32> to vector<8x16x16xf32>
    %cst_16 = arith.constant 0.109360687 : f32
    %35 = vector.broadcast %cst_16 : f32 to vector<8x16x16xf32>
    %36 = arith.mulf %35, %34 : vector<8x16x16xf32>
    %37 = arith.addf %33, %36 : vector<8x16x16xf32>
    %38 = vector.extract_strided_slice %22 {offsets = [0, 4, 0], sizes = [8, 16, 16], strides = [1, 1, 1]} : vector<8x26x16xf32> to vector<8x16x16xf32>
    %cst_17 = arith.constant 0.213005543 : f32
    %39 = vector.broadcast %cst_17 : f32 to vector<8x16x16xf32>
    %40 = arith.mulf %39, %38 : vector<8x16x16xf32>
    %41 = arith.addf %37, %40 : vector<8x16x16xf32>
    %42 = vector.extract_strided_slice %22 {offsets = [0, 5, 0], sizes = [8, 16, 16], strides = [1, 1, 1]} : vector<8x26x16xf32> to vector<8x16x16xf32>
    %cst_18 = arith.constant 0.266011715 : f32
    %43 = vector.broadcast %cst_18 : f32 to vector<8x16x16xf32>
    %44 = arith.mulf %43, %42 : vector<8x16x16xf32>
    %45 = arith.addf %41, %44 : vector<8x16x16xf32>
    %46 = vector.extract_strided_slice %22 {offsets = [0, 6, 0], sizes = [8, 16, 16], strides = [1, 1, 1]} : vector<8x26x16xf32> to vector<8x16x16xf32>
    %cst_19 = arith.constant 0.213005543 : f32
    %47 = vector.broadcast %cst_19 : f32 to vector<8x16x16xf32>
    %48 = arith.mulf %47, %46 : vector<8x16x16xf32>
    %49 = arith.addf %45, %48 : vector<8x16x16xf32>
    %50 = vector.extract_strided_slice %22 {offsets = [0, 7, 0], sizes = [8, 16, 16], strides = [1, 1, 1]} : vector<8x26x16xf32> to vector<8x16x16xf32>
    %cst_20 = arith.constant 0.109360687 : f32
    %51 = vector.broadcast %cst_20 : f32 to vector<8x16x16xf32>
    %52 = arith.mulf %51, %50 : vector<8x16x16xf32>
    %53 = arith.addf %49, %52 : vector<8x16x16xf32>
    %54 = vector.extract_strided_slice %22 {offsets = [0, 8, 0], sizes = [8, 16, 16], strides = [1, 1, 1]} : vector<8x26x16xf32> to vector<8x16x16xf32>
    %cst_21 = arith.constant 0.0360007733 : f32
    %55 = vector.broadcast %cst_21 : f32 to vector<8x16x16xf32>
    %56 = arith.mulf %55, %54 : vector<8x16x16xf32>
    %57 = arith.addf %53, %56 : vector<8x16x16xf32>
    %58 = vector.extract_strided_slice %22 {offsets = [0, 9, 0], sizes = [8, 16, 16], strides = [1, 1, 1]} : vector<8x26x16xf32> to vector<8x16x16xf32>
    %cst_22 = arith.constant 0.00759875821 : f32
    %59 = vector.broadcast %cst_22 : f32 to vector<8x16x16xf32>
    %60 = arith.mulf %59, %58 : vector<8x16x16xf32>
    %61 = arith.addf %57, %60 : vector<8x16x16xf32>
    %62 = vector.extract_strided_slice %22 {offsets = [0, 10, 0], sizes = [8, 16, 16], strides = [1, 1, 1]} : vector<8x26x16xf32> to vector<8x16x16xf32>
    %cst_23 = arith.constant 0.00102838012 : f32
    %63 = vector.broadcast %cst_23 : f32 to vector<8x16x16xf32>
    %64 = arith.mulf %63, %62 : vector<8x16x16xf32>
    %65 = arith.addf %61, %64 : vector<8x16x16xf32>
    %66 = vector.shape_cast %65 : vector<8x16x16xf32> to vector<128x16xf32>
    %cst_24 = arith.constant dense<0.000000e+00> : vector<128x16xf32>
    %67 = tpu.matmul %66, %6, %cst_24 {dimension_numbers = #tpu.dot_dimension_numbers<[1], [0], [0], [1], [0, 0, 1, 1], [], []>} : vector<128x16xf32>, vector<16x16xf32>, vector<128x16xf32> -> vector<128x16xf32>
    %68 = vector.shape_cast %67 : vector<128x16xf32> to vector<8x16x16xf32>
    %69 = vector.extract_strided_slice %68 {offsets = [0, 0, 0], sizes = [1, 16, 16], strides = [1, 1, 1]} : vector<8x16x16xf32> to vector<1x16x16xf32>
    %70 = vector.shape_cast %69 : vector<1x16x16xf32> to vector<16x16xf32>
    %71 = vector.extract_strided_slice %68 {offsets = [1, 0, 0], sizes = [1, 16, 16], strides = [1, 1, 1]} : vector<8x16x16xf32> to vector<1x16x16xf32>
    %72 = vector.shape_cast %71 : vector<1x16x16xf32> to vector<16x16xf32>
    %73 = vector.extract_strided_slice %68 {offsets = [2, 0, 0], sizes = [1, 16, 16], strides = [1, 1, 1]} : vector<8x16x16xf32> to vector<1x16x16xf32>
    %74 = vector.shape_cast %73 : vector<1x16x16xf32> to vector<16x16xf32>
    %75 = vector.extract_strided_slice %68 {offsets = [3, 0, 0], sizes = [1, 16, 16], strides = [1, 1, 1]} : vector<8x16x16xf32> to vector<1x16x16xf32>
    %76 = vector.shape_cast %75 : vector<1x16x16xf32> to vector<16x16xf32>
    %77 = vector.extract_strided_slice %68 {offsets = [4, 0, 0], sizes = [1, 16, 16], strides = [1, 1, 1]} : vector<8x16x16xf32> to vector<1x16x16xf32>
    %78 = vector.shape_cast %77 : vector<1x16x16xf32> to vector<16x16xf32>
    %79 = vector.extract_strided_slice %68 {offsets = [5, 0, 0], sizes = [1, 16, 16], strides = [1, 1, 1]} : vector<8x16x16xf32> to vector<1x16x16xf32>
    %80 = vector.shape_cast %79 : vector<1x16x16xf32> to vector<16x16xf32>
    %81 = vector.extract_strided_slice %68 {offsets = [6, 0, 0], sizes = [1, 16, 16], strides = [1, 1, 1]} : vector<8x16x16xf32> to vector<1x16x16xf32>
    %82 = vector.shape_cast %81 : vector<1x16x16xf32> to vector<16x16xf32>
    %83 = vector.extract_strided_slice %68 {offsets = [7, 0, 0], sizes = [1, 16, 16], strides = [1, 1, 1]} : vector<8x16x16xf32> to vector<1x16x16xf32>
    %84 = vector.shape_cast %83 : vector<1x16x16xf32> to vector<16x16xf32>
    %85 = arith.mulf %70, %70 : vector<16x16xf32>
    %86 = arith.subf %72, %85 : vector<16x16xf32>
    %87 = arith.mulf %74, %74 : vector<16x16xf32>
    %88 = arith.mulf %74, %70 : vector<16x16xf32>
    %89 = arith.subf %76, %87 : vector<16x16xf32>
    %90 = arith.subf %78, %88 : vector<16x16xf32>
    %cst_25 = arith.constant 2.000000e+00 : f32
    %91 = vector.broadcast %cst_25 : f32 to vector<16x16xf32>
    %92 = arith.mulf %91, %88 : vector<16x16xf32>
    %cst_26 = arith.constant 9.99999974E-5 : f32
    %93 = vector.broadcast %cst_26 : f32 to vector<16x16xf32>
    %94 = arith.addf %92, %93 : vector<16x16xf32>
    %cst_27 = arith.constant 2.000000e+00 : f32
    %95 = vector.broadcast %cst_27 : f32 to vector<16x16xf32>
    %96 = arith.mulf %95, %90 : vector<16x16xf32>
    %cst_28 = arith.constant 8.99999984E-4 : f32
    %97 = vector.broadcast %cst_28 : f32 to vector<16x16xf32>
    %98 = arith.addf %96, %97 : vector<16x16xf32>
    %99 = arith.mulf %94, %98 : vector<16x16xf32>
    %100 = arith.mulf %70, %70 : vector<16x16xf32>
    %101 = arith.addf %87, %100 : vector<16x16xf32>
    %cst_29 = arith.constant 9.99999974E-5 : f32
    %102 = vector.broadcast %cst_29 : f32 to vector<16x16xf32>
    %103 = arith.addf %101, %102 : vector<16x16xf32>
    %104 = arith.addf %89, %86 : vector<16x16xf32>
    %cst_30 = arith.constant 8.99999984E-4 : f32
    %105 = vector.broadcast %cst_30 : f32 to vector<16x16xf32>
    %106 = arith.addf %104, %105 : vector<16x16xf32>
    %107 = arith.mulf %103, %106 : vector<16x16xf32>
    %108 = arith.divf %99, %107 : vector<16x16xf32>
    %109 = arith.mulf %80, %80 : vector<16x16xf32>
    %110 = arith.mulf %80, %70 : vector<16x16xf32>
    %111 = arith.subf %82, %109 : vector<16x16xf32>
    %112 = arith.subf %84, %110 : vector<16x16xf32>
    %cst_31 = arith.constant 2.000000e+00 : f32
    %113 = vector.broadcast %cst_31 : f32 to vector<16x16xf32>
    %114 = arith.mulf %113, %110 : vector<16x16xf32>
    %cst_32 = arith.constant 9.99999974E-5 : f32
    %115 = vector.broadcast %cst_32 : f32 to vector<16x16xf32>
    %116 = arith.addf %114, %115 : vector<16x16xf32>
    %cst_33 = arith.constant 2.000000e+00 : f32
    %117 = vector.broadcast %cst_33 : f32 to vector<16x16xf32>
    %118 = arith.mulf %117, %112 : vector<16x16xf32>
    %cst_34 = arith.constant 8.99999984E-4 : f32
    %119 = vector.broadcast %cst_34 : f32 to vector<16x16xf32>
    %120 = arith.addf %118, %119 : vector<16x16xf32>
    %121 = arith.mulf %116, %120 : vector<16x16xf32>
    %122 = arith.mulf %70, %70 : vector<16x16xf32>
    %123 = arith.addf %109, %122 : vector<16x16xf32>
    %cst_35 = arith.constant 9.99999974E-5 : f32
    %124 = vector.broadcast %cst_35 : f32 to vector<16x16xf32>
    %125 = arith.addf %123, %124 : vector<16x16xf32>
    %126 = arith.addf %111, %86 : vector<16x16xf32>
    %cst_36 = arith.constant 8.99999984E-4 : f32
    %127 = vector.broadcast %cst_36 : f32 to vector<16x16xf32>
    %128 = arith.addf %126, %127 : vector<16x16xf32>
    %129 = arith.mulf %125, %128 : vector<16x16xf32>
    %130 = arith.divf %121, %129 : vector<16x16xf32>
    %131 = vector.shape_cast %1 : vector<26x16xf32> to vector<1x26x16xf32>
    %132 = vector.shape_cast %3 : vector<26x16xf32> to vector<1x26x16xf32>
    %133 = tpu.concatenate %131, %132 in 0 : vector<1x26x16xf32>, vector<1x26x16xf32> -> vector<2x26x16xf32>
    %134 = vector.extract_strided_slice %133 {offsets = [0, 4, 0], sizes = [2, 16, 16], strides = [1, 1, 1]} : vector<2x26x16xf32> to vector<2x16x16xf32>
    %cst_37 = arith.constant 1.000000e+00 : f32
    %135 = vector.broadcast %cst_37 : f32 to vector<2x16x16xf32>
    %136 = arith.mulf %135, %134 : vector<2x16x16xf32>
    %137 = vector.extract_strided_slice %133 {offsets = [0, 5, 0], sizes = [2, 16, 16], strides = [1, 1, 1]} : vector<2x26x16xf32> to vector<2x16x16xf32>
    %cst_38 = arith.constant 2.000000e+00 : f32
    %138 = vector.broadcast %cst_38 : f32 to vector<2x16x16xf32>
    %139 = arith.mulf %138, %137 : vector<2x16x16xf32>
    %140 = arith.addf %136, %139 : vector<2x16x16xf32>
    %141 = vector.extract_strided_slice %133 {offsets = [0, 6, 0], sizes = [2, 16, 16], strides = [1, 1, 1]} : vector<2x26x16xf32> to vector<2x16x16xf32>
    %cst_39 = arith.constant 1.000000e+00 : f32
    %142 = vector.broadcast %cst_39 : f32 to vector<2x16x16xf32>
    %143 = arith.mulf %142, %141 : vector<2x16x16xf32>
    %144 = arith.addf %140, %143 : vector<2x16x16xf32>
    %145 = vector.extract_strided_slice %133 {offsets = [0, 4, 0], sizes = [2, 16, 16], strides = [1, 1, 1]} : vector<2x26x16xf32> to vector<2x16x16xf32>
    %cst_40 = arith.constant 1.000000e+00 : f32
    %146 = vector.broadcast %cst_40 : f32 to vector<2x16x16xf32>
    %147 = arith.mulf %146, %145 : vector<2x16x16xf32>
    %148 = vector.extract_strided_slice %133 {offsets = [0, 6, 0], sizes = [2, 16, 16], strides = [1, 1, 1]} : vector<2x26x16xf32> to vector<2x16x16xf32>
    %cst_41 = arith.constant -1.000000e+00 : f32
    %149 = vector.broadcast %cst_41 : f32 to vector<2x16x16xf32>
    %150 = arith.mulf %149, %148 : vector<2x16x16xf32>
    %151 = arith.addf %147, %150 : vector<2x16x16xf32>
    %152 = vector.shape_cast %144 : vector<2x16x16xf32> to vector<32x16xf32>
    %153 = arith.truncf %152 : vector<32x16xf32> to vector<32x16xbf16>
    %cst_42 = arith.constant dense<0.000000e+00> : vector<32x16xf32>
    %154 = tpu.matmul %153, %7, %cst_42 {dimension_numbers = #tpu.dot_dimension_numbers<[1], [0], [0], [1], [0, 0, 1, 1], [], []>} : vector<32x16xbf16>, vector<16x16xbf16>, vector<32x16xf32> -> vector<32x16xf32>
    %155 = vector.shape_cast %154 : vector<32x16xf32> to vector<2x16x16xf32>
    %156 = vector.shape_cast %151 : vector<2x16x16xf32> to vector<32x16xf32>
    %157 = arith.truncf %156 : vector<32x16xf32> to vector<32x16xbf16>
    %cst_43 = arith.constant dense<0.000000e+00> : vector<32x16xf32>
    %158 = tpu.matmul %157, %8, %cst_43 {dimension_numbers = #tpu.dot_dimension_numbers<[1], [0], [0], [1], [0, 0, 1, 1], [], []>} : vector<32x16xbf16>, vector<16x16xbf16>, vector<32x16xf32> -> vector<32x16xf32>
    %159 = vector.shape_cast %158 : vector<32x16xf32> to vector<2x16x16xf32>
    %160 = math.absf %155 : vector<2x16x16xf32>
    %161 = math.absf %159 : vector<2x16x16xf32>
    %162 = arith.addf %160, %161 : vector<2x16x16xf32>
    %163 = vector.extract_strided_slice %162 {offsets = [0, 0, 0], sizes = [1, 16, 16], strides = [1, 1, 1]} : vector<2x16x16xf32> to vector<1x16x16xf32>
    %164 = vector.shape_cast %163 : vector<1x16x16xf32> to vector<16x16xf32>
    %cst_44 = arith.constant dense<0.000000e+00> : vector<16xf32>
    %165 = vector.multi_reduction <add>, %164, %cst_44 [0] : vector<16x16xf32> to vector<16xf32>
    %166 = vector.shape_cast %165 : vector<16xf32> to vector<1x16xf32>
    %c0_45 = arith.constant 0 : index
    %c0_46 = arith.constant 0 : index
    %c0_47 = arith.constant 0 : index
    %167 = vector.load %arg7[%c0_45, %c0_46, %c0_47] : memref<1x4x16xf32, #tpu.memory_space<vmem>>, vector<1x1x16xf32>
    %168 = vector.shape_cast %167 : vector<1x1x16xf32> to vector<1x16xf32>
    %169 = vector.shape_cast %166 : vector<1x16xf32> to vector<1x1x16xf32>
    tpu.vector_store %arg7[%c0_45, %c0_46, %c0_47], %169 {strides = array<i32>} : memref<1x4x16xf32, #tpu.memory_space<vmem>>, vector<1x1x16xf32>,
    %170 = vector.extract_strided_slice %162 {offsets = [1, 0, 0], sizes = [1, 16, 16], strides = [1, 1, 1]} : vector<2x16x16xf32> to vector<1x16x16xf32>
    %171 = vector.shape_cast %170 : vector<1x16x16xf32> to vector<16x16xf32>
    %cst_48 = arith.constant dense<0.000000e+00> : vector<16xf32>
    %172 = vector.multi_reduction <add>, %171, %cst_48 [0] : vector<16x16xf32> to vector<16xf32>
    %173 = vector.shape_cast %172 : vector<16xf32> to vector<1x16xf32>
    %c0_49 = arith.constant 0 : index
    %c1 = arith.constant 1 : index
    %c0_50 = arith.constant 0 : index
    %174 = vector.load %arg7[%c0_49, %c1, %c0_50] : memref<1x4x16xf32, #tpu.memory_space<vmem>>, vector<1x1x16xf32>
    %175 = vector.shape_cast %174 : vector<1x1x16xf32> to vector<1x16xf32>
    %176 = vector.shape_cast %173 : vector<1x16xf32> to vector<1x1x16xf32>
    tpu.vector_store %arg7[%c0_49, %c1, %c0_50], %176 {strides = array<i32>} : memref<1x4x16xf32, #tpu.memory_space<vmem>>, vector<1x1x16xf32>,
    %cst_51 = arith.constant dense<0.000000e+00> : vector<16xf32>
    %177 = vector.multi_reduction <add>, %108, %cst_51 [0] : vector<16x16xf32> to vector<16xf32>
    %178 = vector.shape_cast %177 : vector<16xf32> to vector<1x16xf32>
    %c0_52 = arith.constant 0 : index
    %c2 = arith.constant 2 : index
    %c0_53 = arith.constant 0 : index
    %179 = vector.load %arg7[%c0_52, %c2, %c0_53] : memref<1x4x16xf32, #tpu.memory_space<vmem>>, vector<1x1x16xf32>
    %180 = vector.shape_cast %179 : vector<1x1x16xf32> to vector<1x16xf32>
    %181 = vector.shape_cast %178 : vector<1x16xf32> to vector<1x1x16xf32>
    tpu.vector_store %arg7[%c0_52, %c2, %c0_53], %181 {strides = array<i32>} : memref<1x4x16xf32, #tpu.memory_space<vmem>>, vector<1x1x16xf32>,
    %cst_54 = arith.constant dense<0.000000e+00> : vector<16xf32>
    %182 = vector.multi_reduction <add>, %130, %cst_54 [0] : vector<16x16xf32> to vector<16xf32>
    %183 = vector.shape_cast %182 : vector<16xf32> to vector<1x16xf32>
    %c0_55 = arith.constant 0 : index
    %c3 = arith.constant 3 : index
    %c0_56 = arith.constant 0 : index
    %184 = vector.load %arg7[%c0_55, %c3, %c0_56] : memref<1x4x16xf32, #tpu.memory_space<vmem>>, vector<1x1x16xf32>
    %185 = vector.shape_cast %184 : vector<1x1x16xf32> to vector<1x16xf32>
    %186 = vector.shape_cast %183 : vector<1x16xf32> to vector<1x1x16xf32>
    tpu.vector_store %arg7[%c0_55, %c3, %c0_56], %186 {strides = array<i32>} : memref<1x4x16xf32, #tpu.memory_space<vmem>>, vector<1x1x16xf32>,
    return
  }
  func.func @transform_0(%arg0: i32) -> (i32, i32, i32) {
    %c0_i32 = arith.constant 0 : i32
    %c0_i32_0 = arith.constant 0 : i32
    %c0_i32_1 = arith.constant 0 : i32
    return %arg0, %c0_i32, %c0_i32_0 : i32, i32, i32
  }
  func.func @transform_1(%arg0: i32) -> (i32, i32, i32) {
    %c0_i32 = arith.constant 0 : i32
    %c0_i32_0 = arith.constant 0 : i32
    %c0_i32_1 = arith.constant 0 : i32
    return %arg0, %c0_i32, %c0_i32_0 : i32, i32, i32
  }
  func.func @transform_2(%arg0: i32) -> (i32, i32, i32) {
    %c0_i32 = arith.constant 0 : i32
    %c0_i32_0 = arith.constant 0 : i32
    %c0_i32_1 = arith.constant 0 : i32
    return %arg0, %c0_i32, %c0_i32_0 : i32, i32, i32
  }
  func.func @transform_3(%arg0: i32) -> (i32, i32) {
    %c0_i32 = arith.constant 0 : i32
    %c0_i32_0 = arith.constant 0 : i32
    %c0_i32_1 = arith.constant 0 : i32
    return %c0_i32, %c0_i32_0 : i32, i32
  }
  func.func @transform_4(%arg0: i32) -> (i32, i32) {
    %c0_i32 = arith.constant 0 : i32
    %c0_i32_0 = arith.constant 0 : i32
    %c0_i32_1 = arith.constant 0 : i32
    return %c0_i32, %c0_i32_0 : i32, i32
  }
  func.func @transform_5(%arg0: i32) -> (i32, i32) {
    %c0_i32 = arith.constant 0 : i32
    %c0_i32_0 = arith.constant 0 : i32
    %c0_i32_1 = arith.constant 0 : i32
    return %c0_i32, %c0_i32_0 : i32, i32
  }
  func.func @transform_6(%arg0: i32) -> (i32, i32, i32) {
    %c0_i32 = arith.constant 0 : i32
    %c0_i32_0 = arith.constant 0 : i32
    %c0_i32_1 = arith.constant 0 : i32
    return %arg0, %c0_i32, %c0_i32_0 : i32, i32, i32
  }
}

</mosaic_0001>

<bundles_post_ra>
// kernel: l_ssim.1
= control target key start
LH: loop header
LB: loop body
LE: loop exit
PB: predicated region body
PF: predicated region fallthrough
CT: control target
= control target key end

     0   :  { %s2112_s21 = smov 0   ;;  %s2865_s0 = inlined_call_operand.vmem [shape: f32[2,26,16], index: 0, kind: input, shape index: {}]   ;;  %s2866_s1 = inlined_call_operand.vmem [shape: f32[2,26,16], index: 1, kind: input, shape index: {}]   ;;  %s2867_s2 = inlined_call_operand.vmem [shape: f32[2,26,16], index: 2, kind: input, shape index: {}]   ;;  %s2868_s3 = inlined_call_operand.vmem [shape: f32[16,16], index: 3, kind: input, shape index: {}]   ;;  %s2869_s4 = inlined_call_operand.vmem [shape: bf16[16,16], index: 4, kind: input, shape index: {}]   ;;  %s2870_s5 = inlined_call_operand.vmem [shape: bf16[16,16], index: 5, kind: input, shape index: {}]   ;;  %s2871_s6 = inlined_call_operand.vmem [shape: f32[2,4,16], index: 6, kind: output, shape index: {}]  }
   0x1 LB: > { %s1934_s22 = sadd.s32 4294967295, %s2075_s21   ;;  %p1938_p0 = scmp.ge.s32.totalorder %s2075_s21, 1  ;;  %s2075_s21 = sphi %s2112_s21, %s16_s21  }
   0x2   : > { %p232_p1 = scmp.lt.s32.totalorder %s2075_s21, 3 }
   0x4   : > { %p233_p2 = pnand %p1938_p0, %p232_p1 }
   0x5   : > { %p271_p3 = scmp.lt.s32.totalorder (!%p233_p2), %s1934_s22, 1 }
   0x6   : > { %236 = sbr.rel (%p233_p2) target bundleno = 451 (0x1c3), region = 44 }
   0xb   : > { %v304_v0 = vld [vmem:[%s2868_s3 + $0x8] sm:$0xff]  ;;  %v303_v1 = vld [vmem:[%s2868_s3] sm:$0xff]  ;;  %s2873_s22 = smov (!%p271_p3, %s1934_s22), 1  ;;  %vm393_vm0 = vcmask 1046528   ;;  %vm514_vm1 = vcmask 1045504   ;;  %vm635_vm2 = vcmask 1044480  }
   0xc   : > { %1997 = vmatprep.subr.mxu0 %v304_v0  ;;  %2037 = vmatprep.subr.mxu1 %v304_v0  ;;  %v2131_v2 = vld [vmem:[%s2869_s4] sm:$0xff]   ;;  %s1970_s29 = sshll.u32 %s2873_s22, 5  ;;  %vm756_vm3 = vcmask 1043456   ;;  %vm877_vm4 = vcmask 1042432   ;;  %vm950_vm5 = vcmask 1041408   ;;  %vm1023_vm6 = vcmask 1040384  }
   0xd   : > { %1998 = vmatpush3.msra.mxu0 %v304_v0  ;;  %2039 = vmatpush3.msra.mxu1 %v304_v0  ;;  %s2137_s8 = scalar_lea.vmem %s2865_s0, %s1970_s29  ;;  %s2142_s11 = scalar_lea.vmem %s2866_s1, %s1970_s29  ;;  %vm1280_vm7 = vcmask 130048   ;;  %vm1825_vm8 = vcmask 122880  }
   0xe   : > { %1999 = vmatprep.subr.mxu0 %v303_v1  ;;  %2038 = vmatprep.subr.mxu1 %v303_v1  ;;  %s2148_s14 = scalar_lea.vmem %s2867_s2, %s1970_s29  ;;  %v2151_v3 = vld [vmem:[%s2137_s8] sm:$0xff]  ;;  %v2154_v4 = vld [vmem:[%s2137_s8 + $0x8] sm:$0xff]  ;;  %v2163_v7 = vld [vmem:[%s2142_s11 + $0x10] sm:$0xff]  ;;  %s1945_s17 = sshll.u32 %s2873_s22, 2 }
   0xf   : > { %2000 = vmatpush3.msra.mxu0 %v303_v1  ;;  %2040 = vmatpush3.msra.mxu1 %v303_v1  ;;  %v2157_v5 = vld [vmem:[%s2142_s11] sm:$0xff]  ;;  %v2160_v6 = vld [vmem:[%s2142_s11 + $0x8] sm:$0xff]  ;;  %v2166_v8 = vmul.f32 0.0010283801, %v2151_v3  ;;  %v2169_v9 = vmul.f32 2.0, %v2151_v3  ;;  %v2173_v10 = vmul.f32 %v2151_v3, %v2151_v3  ;;  %v2177_v11 = vmul.f32 %v2154_v4, %v2154_v4  ;;  %v2186_v14 = vld [vmem:[%s2148_s14 + $0x10] sm:$0xff]  ;;  %s2840_s20 = scalar_lea.vmem %s2871_s6, %s1945_s17 }
  0x10   : > { %2025 = vmatprep.subr.bf16.mxu1 %v2131_v2  ;;  %v2180_v12 = vld [vmem:[%s2148_s14] sm:$0xff]  ;;  %v2183_v13 = vld [vmem:[%s2148_s14 + $0x8] sm:$0xff]  ;;  %v2190_v15 = vmul.f32 %v2157_v5, %v2157_v5  ;;  %v2194_v16 = vmul.f32 %v2160_v6, %v2160_v6  ;;  %v2198_v17 = vmul.f32 %v2163_v7, %v2163_v7  ;;  %v2201_v18 = vmul.f32 0.0010283801, %v2154_v4 }
  0x11   : > { %v329_v19 = vmul.f32 0.0010283801, %v2180_v12  ;;  %v2205_v20 = vmul.f32 0.0010283801, %v2183_v13  ;;  %v345_v21 = vmul.f32 0.007598758, %v2180_v12  ;;  %v2210_v22 = vmul.f32 %v2180_v12, %v2180_v12 }
  0x12   : > { %v346_v23 = vmul.f32 0.007598758, %v2183_v13  ;;  %v2214_v24 = vmul.f32 0.007598758, %v2186_v14  ;;  %v466_v25 = vmul.f32 0.036000773, %v2180_v12  ;;  %v2219_v26 = vmul.f32 %v2183_v13, %v2183_v13 }
  0x13   : > { %v394_v27 = vrot.slane %v345_v21, 1  ;;  %v2222_v28 = vmul.f32 0.036000773, %v2183_v13  ;;  %v2225_v29 = vmul.f32 0.036000773, %v2186_v14  ;;  %v1208_v30 = vrot.slane %v2205_v20, 2 }
  0x14   : > { %v395_v31 = vrot.slane %v346_v23, 1  ;;  %v397_v32 = vrot.slane %v2214_v24, 1  ;;  %v515_v33 = vrot.slane %v466_v25, 2  ;;  %v587_v34 = vmul.f32 0.10936069, %v2180_v12 }
  0x15   : > { %v516_v35 = vrot.slane %v2222_v28, 2  ;;  %v518_v36 = vrot.slane %v2225_v29, 2  ;;  %v588_v37 = vmul.f32 0.10936069, %v2183_v13  ;;  %v589_v38 = vmul.f32 0.10936069, %v2186_v14 }
  0x16   : > { %v396_v39 = vsel %vm393_vm0, %v394_v27, %v395_v31  ;;  %v2238_v40 = vsel %vm393_vm0, %v395_v31, %v397_v32  ;;  %v636_v41 = vrot.slane %v587_v34, 3  ;;  %v708_v42 = vmul.f32 0.21300554, %v2180_v12  ;;  %v2255_v31 = vld [vmem:[%s2148_s14 + $0x18] sm:$0x3] }
  0x17   : > { %v450_v43 = vadd.f32 %v396_v39, %v329_v19  ;;  %v451_v44 = vadd.f32 %v2238_v40, %v2205_v20  ;;  %v517_v45 = vsel %vm514_vm1, %v515_v33, %v516_v35  ;;  %v519_v46 = vsel %vm514_vm1, %v516_v35, %v518_v36 }
  0x18   : > { %v637_v47 = vrot.slane %v588_v37, 3  ;;  %v639_v48 = vrot.slane %v589_v38, 3  ;;  %v709_v49 = vmul.f32 0.21300554, %v2183_v13  ;;  %v710_v50 = vmul.f32 0.21300554, %v2186_v14 }
  0x19   : > { %v571_v51 = vadd.f32 %v517_v45, %v450_v43  ;;  %v572_v52 = vadd.f32 %v519_v46, %v451_v44  ;;  %v757_v53 = vrot.slane %v708_v42, 4  ;;  %v829_v54 = vmul.f32 0.26601171, %v2180_v12 }
  0x1a   : > { %v638_v55 = vsel %vm635_vm2, %v636_v41, %v637_v47  ;;  %v640_v56 = vsel %vm635_vm2, %v637_v47, %v639_v48  ;;  %v758_v57 = vrot.slane %v709_v49, 4  ;;  %v760_v58 = vrot.slane %v710_v50, 4 }
  0x1b   : > { %v692_v59 = vadd.f32 %v638_v55, %v571_v51  ;;  %v693_v60 = vadd.f32 %v640_v56, %v572_v52  ;;  %v830_v61 = vmul.f32 0.26601171, %v2183_v13  ;;  %v831_v62 = vmul.f32 0.26601171, %v2186_v14 }
  0x1c   : > { %v759_v63 = vsel %vm756_vm3, %v757_v53, %v758_v57  ;;  %v761_v0 = vsel %vm756_vm3, %v758_v57, %v760_v58  ;;  %v878_v1 = vrot.slane %v829_v54, 5  ;;  %v951_v19 = vrot.slane %v708_v42, 6 }
  0x1d   : > { %v813_v21 = vadd.f32 %v759_v63, %v692_v59  ;;  %v814_v23 = vadd.f32 %v761_v0, %v693_v60  ;;  %v879_v25 = vrot.slane %v830_v61, 5  ;;  %v881_v27 = vrot.slane %v831_v62, 5 }
  0x1e   : > { %v952_v33 = vrot.slane %v709_v49, 6  ;;  %v1024_v35 = vrot.slane %v587_v34, 7  ;;  %v1025_v36 = vrot.slane %v588_v37, 7  ;;  %v1168_v39 = vmul.f32 0.0010283801, %v2186_v14 }
  0x1f   : > { %v880_v41 = vsel %vm877_vm4, %v878_v1, %v879_v25  ;;  %v882_v43 = vsel %vm877_vm4, %v879_v25, %v881_v27  ;;  %v954_v44 = vrot.slane %v710_v50, 6  ;;  %v1027_v45 = vrot.slane %v589_v38, 7 }
  0x20   : > { %v934_v46 = vadd.f32 %v880_v41, %v813_v21  ;;  %v935_v47 = vadd.f32 %v882_v43, %v814_v23  ;;  %v953_v42 = vsel %vm950_vm5, %v951_v19, %v952_v33  ;;  %v1026_v48 = vsel %vm1023_vm6, %v1024_v35, %v1025_v36 }
  0x21   : > { %v1209_v51 = vrot.slane %v1168_v39, 2  ;;  %v955_v49 = vsel %vm950_vm5, %v952_v33, %v954_v44  ;;  %v1028_v34 = vsel %vm1023_vm6, %v1025_v36, %v1027_v45  ;;  %v1112_v37 = vmul.f32 0.007598758, %v2255_v31 }
  0x22   : > { %v1007_v52 = vadd.f32 %v953_v42, %v934_v46  ;;  %v1008_v53 = vadd.f32 %v955_v49, %v935_v47  ;;  %v1169_v54 = vmul.f32 0.0010283801, %v2255_v31  ;;  %v341_v38 = vmul.f32 0.0010283801, %v2190_v15 }
  0x23   : > { %v1210_v50 = vsel %vm514_vm1, %v1208_v30, %v1209_v51  ;;  %v1128_v55 = vrot.slane %v1112_v37, 1  ;;  %v2271_v56 = vmul.f32 0.0010283801, %v2194_v16  ;;  %v363_v57 = vmul.f32 0.007598758, %v2190_v15 }
  0x24   : > { %v1080_v58 = vadd.f32 %v1026_v48, %v1007_v52  ;;  %v1081_v59 = vadd.f32 %v1028_v34, %v1008_v53  ;;  %v1211_v60 = vrot.slane %v1169_v54, 2  ;;  %v364_v61 = vmul.f32 0.007598758, %v2194_v16 }
  0x25   : > { %v1129_v62 = vsel %vm393_vm0, %v397_v32, %v1128_v55  ;;  %v2279_v63 = vmul.f32 0.007598758, %v2198_v17  ;;  %v424_v20 = vrot.slane %v363_v57, 1  ;;  %v484_v30 = vmul.f32 0.036000773, %v2190_v15 }
  0x26   : > { %v1096_v0 = vadd.f32 %v1080_v58, %v2222_v28  ;;  %v1097_v1 = vadd.f32 %v1081_v59, %v2225_v29  ;;  %v1212_v19 = vsel %vm514_vm1, %v1209_v51, %v1211_v60  ;;  %v425_v21 = vrot.slane %v364_v61, 1 }
  0x27   : > { %v427_v23 = vrot.slane %v2279_v63, 1  ;;  %v2287_v25 = vmul.f32 0.036000773, %v2194_v16  ;;  %v2290_v24 = vmul.f32 0.036000773, %v2198_v17  ;;  %v545_v32 = vrot.slane %v484_v30, 2 }
  0x28   : > { %v1152_v27 = vadd.f32 %v1096_v0, %v2238_v40  ;;  %v1153_v33 = vadd.f32 %v1129_v62, %v1097_v1  ;;  %v426_v35 = vsel %vm393_vm0, %v424_v20, %v425_v21  ;;  %v605_v28 = vmul.f32 0.10936069, %v2190_v15 }
  0x29   : > { %v2298_v29 = vsel %vm393_vm0, %v425_v21, %v427_v23  ;;  %v462_v36 = vadd.f32 %v426_v35, %v341_v38  ;;  %v546_v39 = vrot.slane %v2287_v25, 2  ;;  %v548_v41 = vrot.slane %v2290_v24, 2 }
  0x2a   : > { %v1264_v43 = vadd.f32 %v1210_v50, %v1152_v27  ;;  %v1265_v44 = vadd.f32 %v1212_v19, %v1153_v33  ;;  %v463_v40 = vadd.f32 %v2298_v29, %v2271_v56  ;;  %v606_v45 = vmul.f32 0.10936069, %v2194_v16  ;;  %v2321_v33 = vld [vmem:[%s2142_s11 + $0x18] sm:$0x3] }
  0x2b   : > { %v547_v46 = vsel %vm514_vm1, %v545_v32, %v546_v39  ;;  %v549_v47 = vsel %vm514_vm1, %v546_v39, %v548_v41  ;;  %v607_v42 = vmul.f32 0.10936069, %v2198_v17  ;;  %v666_v48 = vrot.slane %v605_v28, 3 }
  0x2c   : > { %2001 = vmatprep.mubr.msk.f32.mxu0 %vm1280_vm7, %v1264_v43  ;;  %v583_v51 = vadd.f32 %v547_v46, %v462_v36  ;;  %v584_v49 = vadd.f32 %v549_v47, %v463_v40  ;;  %v667_v34 = vrot.slane %v606_v45, 3  ;;  %v726_v37 = vmul.f32 0.21300554, %v2190_v15 }
  0x2d   : > { %2002 = vmatmul.mubr.msk.f32.vlgmr.msra.gmra.mxu0 %vm1280_vm7, %v1265_v44  ;;  %v669_v52 = vrot.slane %v607_v42, 3  ;;  %v727_v53 = vmul.f32 0.21300554, %v2194_v16  ;;  %v728_v54 = vmul.f32 0.21300554, %v2198_v17  ;;  %v1054_v38 = vrot.slane %v605_v28, 7 }
  0x2e   : > { %v668_v50 = vsel %vm635_vm2, %v666_v48, %v667_v34  ;;  %v787_v55 = vrot.slane %v726_v37, 4  ;;  %v847_v57 = vmul.f32 0.26601171, %v2190_v15  ;;  %v848_v58 = vmul.f32 0.26601171, %v2194_v16 }
  0x2f   : > { %v670_v59 = vsel %vm635_vm2, %v667_v34, %v669_v52  ;;  %v704_v60 = vadd.f32 %v668_v50, %v583_v51  ;;  %v788_v61 = vrot.slane %v727_v53, 4  ;;  %v790_v62 = vrot.slane %v728_v54, 4 }
  0x30   : > { %v705_v20 = vadd.f32 %v670_v59, %v584_v49  ;;  %v849_v30 = vmul.f32 0.26601171, %v2198_v17  ;;  %v908_v0 = vrot.slane %v847_v57, 5  ;;  %v909_v1 = vrot.slane %v848_v58, 5 }
  0x31   : > { %v789_v19 = vsel %vm756_vm3, %v787_v55, %v788_v61  ;;  %v791_v21 = vsel %vm756_vm3, %v788_v61, %v790_v62  ;;  %v981_v32 = vrot.slane %v726_v37, 6  ;;  %v982_v27 = vrot.slane %v727_v53, 6 }
  0x32   : > { %v825_v15 = vadd.f32 %v789_v19, %v704_v60  ;;  %v826_v16 = vadd.f32 %v791_v21, %v705_v20  ;;  %v910_v35 = vsel %vm877_vm4, %v908_v0, %v909_v1  ;;  %v911_v28 = vrot.slane %v849_v30, 5 }
  0x33   : > { %v983_v36 = vsel %vm950_vm5, %v981_v32, %v982_v27  ;;  %v1055_v39 = vrot.slane %v606_v45, 7  ;;  %v1180_v41 = vmul.f32 0.0010283801, %v2198_v17  ;;  %v1238_v43 = vrot.slane %v2271_v56, 2 }
  0x34   : > { %v912_v44 = vsel %vm877_vm4, %v909_v1, %v911_v28  ;;  %v946_v40 = vadd.f32 %v910_v35, %v825_v15  ;;  %v324_v46 = vmul.f32 %v2321_v33, %v2321_v33  ;;  %v984_v47 = vrot.slane %v728_v54, 6 }
  0x35   : > { %v947_v48 = vadd.f32 %v912_v44, %v826_v16  ;;  %v1056_v51 = vsel %vm1023_vm6, %v1054_v38, %v1055_v39  ;;  %v1239_v49 = vrot.slane %v1180_v41, 2  ;;  %v1057_v34 = vrot.slane %v607_v42, 7 }
  0x36   : > { %v1019_v37 = vadd.f32 %v983_v36, %v946_v40  ;;  %v985_v52 = vsel %vm950_vm5, %v982_v27, %v984_v47  ;;  %v1118_v45 = vmul.f32 0.007598758, %v324_v46  ;;  %v1181_v53 = vmul.f32 0.0010283801, %v324_v46  ;;  %v2377_v46 = vld [vmem:[%s2870_s5] sm:$0xff]  }
  0x37   : > { %v1240_v17 = vsel %vm514_vm1, %v1238_v43, %v1239_v49  ;;  %v1020_v56 = vadd.f32 %v985_v52, %v947_v48  ;;  %v1058_v50 = vsel %vm1023_vm6, %v1055_v39, %v1057_v34  ;;  %v2336_v55 = vmul.f32 %v2186_v14, %v2186_v14 }
  0x38   : > { %v1092_v54 = vadd.f32 %v1056_v51, %v1019_v37  ;;  %v1140_v57 = vrot.slane %v1118_v45, 1  ;;  %v1241_v58 = vrot.slane %v1181_v53, 2  ;;  %v331_v38 = vmul.f32 0.0010283801, %v2210_v22 }
  0x39   : > { %v1093_v42 = vadd.f32 %v1058_v50, %v1020_v56  ;;  %v2340_v59 = vmul.f32 0.0010283801, %v2219_v26  ;;  %v348_v60 = vmul.f32 0.007598758, %v2210_v22  ;;  %v349_v61 = vmul.f32 0.007598758, %v2219_v26 }
  0x3a   : > { %v1108_v62 = vadd.f32 %v1092_v54, %v2287_v25  ;;  %v1141_v20 = vsel %vm393_vm0, %v427_v23, %v1140_v57  ;;  %v1242_v30 = vsel %vm514_vm1, %v1239_v49, %v1241_v58  ;;  %v2350_v0 = vmul.f32 0.007598758, %v2336_v55 }
  0x3b   : > { %v1109_v1 = vadd.f32 %v1093_v42, %v2290_v24  ;;  %v399_v19 = vrot.slane %v348_v60, 1  ;;  %v400_v21 = vrot.slane %v349_v61, 1  ;;  %v469_v32 = vmul.f32 0.036000773, %v2210_v22 }
  0x3c   : > { %v1164_v27 = vadd.f32 %v1108_v62, %v2298_v29  ;;  %v402_v15 = vrot.slane %v2350_v0, 1  ;;  %v2357_v25 = vmul.f32 0.036000773, %v2219_v26  ;;  %v2360_v63 = vmul.f32 0.036000773, %v2336_v55 }
  0x3d   : > { %v1165_v23 = vadd.f32 %v1141_v20, %v1109_v1  ;;  %v401_v16 = vsel %vm393_vm0, %v399_v19, %v400_v21  ;;  %v520_v35 = vrot.slane %v469_v32, 2  ;;  %v590_v24 = vmul.f32 0.10936069, %v2210_v22 }
  0x3e   : > { %v1276_v28 = vadd.f32 %v1240_v17, %v1164_v27  ;;  %v2367_v36 = vsel %vm393_vm0, %v400_v21, %v402_v15  ;;  %v452_v29 = vadd.f32 %v401_v16, %v331_v38  ;;  %v521_v39 = vrot.slane %v2357_v25, 2 }
  0x3f   : > { %v1277_v41 = vadd.f32 %v1242_v30, %v1165_v23  ;;  %v453_v43 = vadd.f32 %v2367_v36, %v2340_v59  ;;  %v523_v44 = vrot.slane %v2360_v63, 2  ;;  %v591_v40 = vmul.f32 0.10936069, %v2219_v26 }
  0x40   : > { %2019 = vmatprep.mubr.msk.f32.mxu1 %vm1280_vm7, %v1276_v28  ;;  %v522_v47 = vsel %vm514_vm1, %v520_v35, %v521_v39  ;;  %v592_v48 = vmul.f32 0.10936069, %v2336_v55  ;;  %v641_v51 = vrot.slane %v590_v24, 3  ;;  %v711_v49 = vmul.f32 0.21300554, %v2210_v22 }
  0x41   : > { %2020 = vmatmul.mubr.msk.f32.vlgmr.msra.gmra.mxu1 %vm1280_vm7, %v1277_v41  ;;  %v524_v34 = vsel %vm514_vm1, %v521_v39, %v523_v44  ;;  %v573_v37 = vadd.f32 %v522_v47, %v452_v29  ;;  %v642_v52 = vrot.slane %v591_v40, 3  ;;  %v712_v45 = vmul.f32 0.21300554, %v2219_v26 }
  0x42   : > { %v574_v53 = vadd.f32 %v524_v34, %v453_v43  ;;  %v644_v17 = vrot.slane %v592_v48, 3  ;;  %v713_v56 = vmul.f32 0.21300554, %v2336_v55  ;;  %v762_v50 = vrot.slane %v711_v49, 4  ;;  %2026 = vmatpush3.bf16.msra.mxu1 %v2131_v2 }
  0x43   : > { %v643_v54 = vsel %vm635_vm2, %v641_v51, %v642_v52  ;;  %v763_v57 = vrot.slane %v712_v45, 4  ;;  %v832_v58 = vmul.f32 0.26601171, %v2210_v22  ;;  %v833_v38 = vmul.f32 0.26601171, %v2219_v26  ;;  %2031 = vmatprep.subr.bf16.mxu1 %v2377_v46 }
  0x44   : > { %v645_v42 = vsel %vm635_vm2, %v642_v52, %v644_v17  ;;  %v694_v60 = vadd.f32 %v643_v54, %v573_v37  ;;  %v765_v61 = vrot.slane %v713_v56, 4  ;;  %v956_v62 = vrot.slane %v711_v49, 6 }
  0x45   : > { %v695_v20 = vadd.f32 %v645_v42, %v574_v53  ;;  %v764_v30 = vsel %vm756_vm3, %v762_v50, %v763_v57  ;;  %v883_v1 = vrot.slane %v832_v58, 5  ;;  %v884_v19 = vrot.slane %v833_v38, 5 }
  0x46   : > { %v766_v2 = vsel %vm756_vm3, %v763_v57, %v765_v61  ;;  %v815_v21 = vadd.f32 %v764_v30, %v694_v60  ;;  %v957_v32 = vrot.slane %v712_v45, 6  ;;  %v1029_v27 = vrot.slane %v590_v24, 7 }
  0x47   : > { %v816_v22 = vadd.f32 %v766_v2, %v695_v20  ;;  %v885_v26 = vsel %vm877_vm4, %v883_v1, %v884_v19  ;;  %v1030_v23 = vrot.slane %v591_v40, 7  ;;  %v1170_v16 = vmul.f32 0.0010283801, %v2336_v55 }
  0x48   : > { %v936_v35 = vadd.f32 %v885_v26, %v815_v21  ;;  %v958_v28 = vsel %vm950_vm5, %v956_v62, %v957_v32  ;;  %v1213_v29 = vrot.slane %v2340_v59, 2  ;;  %v312_v39 = vmul.f32 %v2255_v31, %v2255_v31 }
  0x49   : > { %v1031_v41 = vsel %vm1023_vm6, %v1029_v27, %v1030_v23  ;;  %v1214_v43 = vrot.slane %v1170_v16, 2  ;;  %v834_v44 = vmul.f32 0.26601171, %v2336_v55  ;;  %v959_v24 = vrot.slane %v713_v56, 6 }
  0x4a   : > { %v1009_v47 = vadd.f32 %v958_v28, %v936_v35  ;;  %v1032_v51 = vrot.slane %v592_v48, 7  ;;  %v1113_v49 = vmul.f32 0.007598758, %v312_v39  ;;  %v1171_v40 = vmul.f32 0.0010283801, %v312_v39 }
  0x4b   : > { %v1215_v34 = vsel %vm514_vm1, %v1213_v29, %v1214_v43  ;;  %v886_v37 = vrot.slane %v834_v44, 5  ;;  %v960_v52 = vsel %vm950_vm5, %v957_v32, %v959_v24  ;;  %v325_v59 = vmul.f32 %v2180_v12, %v2157_v5 }
  0x4c   : > { %v1082_v45 = vadd.f32 %v1031_v41, %v1009_v47  ;;  %v1033_v53 = vsel %vm1023_vm6, %v1030_v23, %v1032_v51  ;;  %v1130_v17 = vrot.slane %v1113_v49, 1  ;;  %v1216_v50 = vrot.slane %v1171_v40, 2 }
  0x4d   : > { %v887_v55 = vsel %vm877_vm4, %v884_v19, %v886_v37  ;;  %v326_v48 = vmul.f32 %v2183_v13, %v2160_v6  ;;  %v2413_v56 = vmul.f32 %v2186_v14, %v2163_v7  ;;  %v343_v54 = vmul.f32 0.0010283801, %v325_v59 }
  0x4e   : > { %v1098_v57 = vadd.f32 %v1082_v45, %v2357_v25  ;;  %v937_v58 = vadd.f32 %v887_v55, %v816_v22  ;;  %v1131_v12 = vsel %vm393_vm0, %v402_v15, %v1130_v17  ;;  %v1217_v38 = vsel %vm514_vm1, %v1214_v43, %v1216_v50 }
  0x4f   : > { %v2420_v42 = vmul.f32 0.0010283801, %v326_v48  ;;  %v366_v60 = vmul.f32 0.007598758, %v325_v59  ;;  %v367_v61 = vmul.f32 0.007598758, %v326_v48  ;;  %v2424_v13 = vmul.f32 %v2255_v31, %v2321_v33 }
  0x50   : > { %v1154_v14 = vadd.f32 %v1098_v57, %v2367_v36  ;;  %v1010_v62 = vadd.f32 %v960_v52, %v937_v58  ;;  %v2428_v25 = vmul.f32 0.007598758, %v2413_v56  ;;  %v487_v20 = vmul.f32 0.036000773, %v325_v59 }
  0x51   : > { %v429_v0 = vrot.slane %v366_v60, 1  ;;  %v430_v30 = vrot.slane %v367_v61, 1  ;;  %v2430_v15 = vmul.f32 0.036000773, %v326_v48  ;;  %v2433_v1 = vmul.f32 0.036000773, %v2413_v56 }
  0x52   : > { %v1266_v19 = vadd.f32 %v1215_v34, %v1154_v14  ;;  %v1083_v2 = vadd.f32 %v1033_v53, %v1010_v62  ;;  %v432_v21 = vrot.slane %v2428_v25, 1  ;;  %v550_v31 = vrot.slane %v487_v20, 2 }
  0x53   : > { %v431_v33 = vsel %vm393_vm0, %v429_v0, %v430_v30  ;;  %v551_v36 = vrot.slane %v2430_v15, 2  ;;  %v553_v32 = vrot.slane %v2433_v1, 2  ;;  %v608_v27 = vmul.f32 0.10936069, %v325_v59 }
  0x54   : > { %2004 = vmatprep.mubr.msk.f32.mxu0 %vm1280_vm7, %v1266_v19  ;;  %v1099_v22 = vadd.f32 %v1083_v2, %v2360_v63  ;;  %v2444_v26 = vsel %vm393_vm0, %v430_v30, %v432_v21  ;;  %v464_v23 = vadd.f32 %v431_v33, %v343_v54  ;;  %v609_v16 = vmul.f32 0.10936069, %v326_v48 }
  0x55   : > { %v465_v35 = vadd.f32 %v2444_v26, %v2420_v42  ;;  %v552_v28 = vsel %vm514_vm1, %v550_v31, %v551_v36  ;;  %v554_v29 = vsel %vm514_vm1, %v551_v36, %v553_v32  ;;  %v610_v39 = vmul.f32 0.10936069, %v2413_v56  ;;  %v2464_v32 = vld [vmem:[%s2137_s8 + $0x10] sm:$0xff] }
  0x56   : > { %v1155_v41 = vadd.f32 %v1131_v12, %v1099_v22  ;;  %v585_v43 = vadd.f32 %v552_v28, %v464_v23  ;;  %v671_v44 = vrot.slane %v608_v27, 3  ;;  %v672_v63 = vrot.slane %v609_v16, 3 }
  0x57   : > { %v586_v24 = vadd.f32 %v554_v29, %v465_v35  ;;  %v674_v47 = vrot.slane %v610_v39, 3  ;;  %v729_v51 = vmul.f32 0.21300554, %v325_v59  ;;  %v730_v49 = vmul.f32 0.21300554, %v326_v48 }
  0x58   : > { %v1267_v40 = vadd.f32 %v1217_v38, %v1155_v41  ;;  %v673_v34 = vsel %vm635_vm2, %v671_v44, %v672_v63  ;;  %v731_v37 = vmul.f32 0.21300554, %v2413_v56  ;;  %v850_v52 = vmul.f32 0.26601171, %v325_v59 }
  0x59   : > { %v675_v45 = vsel %vm635_vm2, %v672_v63, %v674_v47  ;;  %v706_v53 = vadd.f32 %v673_v34, %v585_v43  ;;  %v792_v17 = vrot.slane %v729_v51, 4  ;;  %v793_v50 = vrot.slane %v730_v49, 4 }
  0x5a   : > { %2005 = vmatmul.mubr.msk.f32.gmra.mxu0 %vm1280_vm7, %v1267_v40  ;;  %v707_v55 = vadd.f32 %v675_v45, %v586_v24  ;;  %v795_v54 = vrot.slane %v731_v37, 4  ;;  %v851_v57 = vmul.f32 0.26601171, %v326_v48  ;;  %v913_v58 = vrot.slane %v850_v52, 5 }
  0x5b   : > { %v794_v12 = vsel %vm756_vm3, %v792_v17, %v793_v50  ;;  %v986_v38 = vrot.slane %v729_v51, 6  ;;  %v987_v60 = vrot.slane %v730_v49, 6  ;;  %v1059_v61 = vrot.slane %v608_v27, 7 }
  0x5c   : > { %v796_v14 = vsel %vm756_vm3, %v793_v50, %v795_v54  ;;  %v827_v59 = vadd.f32 %v794_v12, %v706_v53  ;;  %v914_v62 = vrot.slane %v851_v57, 5  ;;  %v1060_v20 = vrot.slane %v609_v16, 7 }
  0x5d   : > { %v828_v0 = vadd.f32 %v796_v14, %v707_v55  ;;  %v988_v30 = vsel %vm950_vm5, %v986_v38, %v987_v60  ;;  %v1182_v19 = vmul.f32 0.0010283801, %v2413_v56  ;;  %v1243_v2 = vrot.slane %v2420_v42, 2 }
  0x5e   : > { %v915_v48 = vsel %vm877_vm4, %v913_v58, %v914_v62  ;;  %v1061_v31 = vsel %vm1023_vm6, %v1059_v61, %v1060_v20  ;;  %v852_v33 = vmul.f32 0.26601171, %v2413_v56  ;;  %v989_v36 = vrot.slane %v731_v37, 6 }
  0x5f   : > { %v948_v27 = vadd.f32 %v915_v48, %v827_v59  ;;  %v1244_v22 = vrot.slane %v1182_v19, 2  ;;  %v1062_v23 = vrot.slane %v610_v39, 7  ;;  %v1119_v16 = vmul.f32 0.007598758, %v2424_v13 }
  0x60   : > { %v916_v35 = vrot.slane %v852_v33, 5  ;;  %v990_v28 = vsel %vm950_vm5, %v987_v60, %v989_v36  ;;  %v1183_v29 = vmul.f32 0.0010283801, %v2424_v13  ;;  %v351_v42 = vmul.f32 0.007598758, %v2151_v3 }
  0x61   : > { %v1021_v41 = vadd.f32 %v988_v30, %v948_v27  ;;  %v1245_v43 = vsel %vm514_vm1, %v1243_v2, %v1244_v22  ;;  %v1063_v56 = vsel %vm1023_vm6, %v1060_v20, %v1062_v23  ;;  %v1142_v44 = vrot.slane %v1119_v16, 1 }
  0x62   : > { %v917_v63 = vsel %vm877_vm4, %v914_v62, %v916_v35  ;;  %v1246_v24 = vrot.slane %v1183_v29, 2  ;;  %v352_v39 = vmul.f32 0.007598758, %v2154_v4  ;;  %v2475_v47 = vmul.f32 0.007598758, %v2464_v32 }
  0x63   : > { %v1094_v51 = vadd.f32 %v1061_v31, %v1021_v41  ;;  %v949_v49 = vadd.f32 %v917_v63, %v828_v0  ;;  %v1143_v13 = vsel %vm393_vm0, %v432_v21, %v1142_v44  ;;  %v404_v40 = vrot.slane %v351_v42, 1 }
  0x64   : > { %v1247_v34 = vsel %vm514_vm1, %v1244_v22, %v1246_v24  ;;  %v405_v37 = vrot.slane %v352_v39, 1  ;;  %v407_v52 = vrot.slane %v2475_v47, 1  ;;  %v472_v45 = vmul.f32 0.036000773, %v2151_v3 }
  0x65   : > { %v1110_v53 = vadd.f32 %v1094_v51, %v2430_v15  ;;  %v1022_v17 = vadd.f32 %v990_v28, %v949_v49  ;;  %v2485_v50 = vmul.f32 0.036000773, %v2154_v4  ;;  %v2488_v55 = vmul.f32 0.036000773, %v2464_v32 }
  0x66   : > { %v406_v25 = vsel %vm393_vm0, %v404_v40, %v405_v37  ;;  %v2494_v21 = vsel %vm393_vm0, %v405_v37, %v407_v52  ;;  %v525_v54 = vrot.slane %v472_v45, 2  ;;  %v593_v57 = vmul.f32 0.10936069, %v2151_v3 }
  0x67   : > { %v1166_v58 = vadd.f32 %v1110_v53, %v2444_v26  ;;  %v1095_v15 = vadd.f32 %v1063_v56, %v1022_v17  ;;  %v454_v12 = vadd.f32 %v406_v25, %v2166_v8  ;;  %v455_v38 = vadd.f32 %v2494_v21, %v2201_v18 }
  0x68   : > { %v526_v60 = vrot.slane %v2485_v50, 2  ;;  %v528_v61 = vrot.slane %v2488_v55, 2  ;;  %v594_v14 = vmul.f32 0.10936069, %v2154_v4  ;;  %v595_v59 = vmul.f32 0.10936069, %v2464_v32 }
  0x69   : > { %v1278_v62 = vadd.f32 %v1245_v43, %v1166_v58  ;;  %v1111_v20 = vadd.f32 %v1095_v15, %v2433_v1  ;;  %v646_v0 = vrot.slane %v593_v57, 3  ;;  %v714_v26 = vmul.f32 0.21300554, %v2151_v3 }
  0x6a   : > { %v527_v30 = vsel %vm514_vm1, %v525_v54, %v526_v60  ;;  %v529_v8 = vsel %vm514_vm1, %v526_v60, %v528_v61  ;;  %v647_v19 = vrot.slane %v594_v14, 3  ;;  %v649_v2 = vrot.slane %v595_v59, 3 }
  0x6b   : > { %2022 = vmatprep.mubr.msk.f32.mxu1 %vm1280_vm7, %v1278_v62  ;;  %v1167_v48 = vadd.f32 %v1143_v13, %v1111_v20  ;;  %v575_v31 = vadd.f32 %v527_v30, %v454_v12  ;;  %v576_v33 = vadd.f32 %v529_v8, %v455_v38  ;;  %v715_v36 = vmul.f32 0.21300554, %v2154_v4 }
  0x6c   : > { %v648_v27 = vsel %vm635_vm2, %v646_v0, %v647_v19  ;;  %v650_v1 = vsel %vm635_vm2, %v647_v19, %v649_v2  ;;  %v716_v22 = vmul.f32 0.21300554, %v2464_v32  ;;  %v767_v23 = vrot.slane %v714_v26, 4 }
  0x6d   : > { %v1279_v16 = vadd.f32 %v1247_v34, %v1167_v48  ;;  %v696_v35 = vadd.f32 %v648_v27, %v575_v31  ;;  %v697_v28 = vadd.f32 %v650_v1, %v576_v33  ;;  %v768_v29 = vrot.slane %v715_v36, 4  ;;  %v2520_v34 = vld [vmem:[%s2137_s8 + $0x18] sm:$0x3] }
  0x6e   : > { %v770_v42 = vrot.slane %v716_v22, 4  ;;  %v835_v41 = vmul.f32 0.26601171, %v2151_v3  ;;  %v836_v43 = vmul.f32 0.26601171, %v2154_v4  ;;  %v961_v56 = vrot.slane %v714_v26, 6 }
  0x6f   : > { %2023 = vmatmul.mubr.msk.f32.gmra.mxu1 %vm1280_vm7, %v1279_v16  ;;  %v769_v44 = vsel %vm756_vm3, %v767_v23, %v768_v29  ;;  %v962_v63 = vrot.slane %v715_v36, 6  ;;  %v1034_v24 = vrot.slane %v593_v57, 7  ;;  %v1035_v39 = vrot.slane %v594_v14, 7 }
  0x70   : > { %v771_v51 = vsel %vm756_vm3, %v768_v29, %v770_v42  ;;  %v817_v49 = vadd.f32 %v769_v44, %v696_v35  ;;  %v888_v13 = vrot.slane %v835_v41, 5  ;;  %v889_v40 = vrot.slane %v836_v43, 5 }
  0x71   : > { %v818_v37 = vadd.f32 %v771_v51, %v697_v28  ;;  %v963_v45 = vsel %vm950_vm5, %v961_v56, %v962_v63  ;;  %v1036_v53 = vsel %vm1023_vm6, %v1034_v24, %v1035_v39  ;;  %v1172_v17 = vmul.f32 0.0010283801, %v2464_v32 }
  0x72   : > { %v890_v25 = vsel %vm877_vm4, %v888_v13, %v889_v40  ;;  %v1218_v54 = vrot.slane %v2201_v18, 2  ;;  %v837_v57 = vmul.f32 0.26601171, %v2464_v32  ;;  %v964_v58 = vrot.slane %v716_v22, 6 }
  0x73   : > { %v938_v15 = vadd.f32 %v890_v25, %v817_v49  ;;  %v1219_v12 = vrot.slane %v1172_v17, 2  ;;  %v1037_v38 = vrot.slane %v595_v59, 7  ;;  %v1114_v60 = vmul.f32 0.007598758, %v2520_v34 }
  0x74   : > { %v891_v61 = vrot.slane %v837_v57, 5  ;;  %v965_v14 = vsel %vm950_vm5, %v962_v63, %v964_v58  ;;  %v1173_v62 = vmul.f32 0.0010283801, %v2520_v34  ;;  %v1543_v20 = vmul.f32 2.0, %v2154_v4 }
  0x75   : > { %v1011_v0 = vadd.f32 %v963_v45, %v938_v15  ;;  %v1220_v26 = vsel %vm514_vm1, %v1218_v54, %v1219_v12  ;;  %v1038_v18 = vsel %vm1023_vm6, %v1035_v39, %v1037_v38  ;;  %v1132_v30 = vrot.slane %v1114_v60, 1 }
  0x76   : > { %v892_v8 = vsel %vm877_vm4, %v889_v40, %v891_v61  ;;  %v1221_v19 = vrot.slane %v1173_v62, 2  ;;  %v1544_v59 = vmul.f32 2.0, %v2464_v32  ;;  %v1554_v2 = vrot.slane %v2169_v9, 1 }
  0x77   : > { %v1084_v48 = vadd.f32 %v1036_v53, %v1011_v0  ;;  %v939_v31 = vadd.f32 %v892_v8, %v818_v37  ;;  %v1133_v33 = vsel %vm393_vm0, %v407_v52, %v1132_v30  ;;  %v1555_v36 = vrot.slane %v1543_v20, 1 }
  0x78   : > { %v1222_v27 = vsel %vm514_vm1, %v1219_v12, %v1221_v19  ;;  %v1557_v1 = vrot.slane %v1544_v59, 1  ;;  %v1582_v22 = vrot.slane %v2151_v3, 2  ;;  %v1583_v23 = vrot.slane %v2154_v4, 2 }
  0x79   : > { %v1100_v16 = vadd.f32 %v1084_v48, %v2485_v50  ;;  %v1012_v35 = vadd.f32 %v965_v14, %v939_v31  ;;  %v1556_v28 = vsel %vm393_vm0, %v1554_v2, %v1555_v36  ;;  %v1585_v9 = vrot.slane %v2464_v32, 2 }
  0x7a   : > { %v1558_v29 = vsel %vm393_vm0, %v1555_v36, %v1557_v1  ;;  %v1570_v47 = vadd.f32 %v1556_v28, %v2151_v3  ;;  %v1572_v52 = vadd.f32 %v1557_v1, %v2464_v32  ;;  %v1584_v42 = vsel %vm514_vm1, %v1582_v22, %v1583_v23 }
  0x7b   : > { %v1156_v41 = vadd.f32 %v1100_v16, %v2494_v21  ;;  %v1085_v43 = vadd.f32 %v1038_v18, %v1012_v35  ;;  %v1571_v56 = vadd.f32 %v1558_v29, %v2154_v4  ;;  %v1586_v50 = vsel %vm514_vm1, %v1583_v23, %v1585_v9 }
  0x7c   : > { %v1598_v44 = vadd.f32 %v1584_v42, %v1570_v47  ;;  %v1600_v63 = vadd.f32 %v1585_v9, %v1572_v52  ;;  %v1545_v24 = vmul.f32 2.0, %v2157_v5  ;;  %v1546_v39 = vmul.f32 2.0, %v2160_v6 }
  0x7d   : > { %v1268_v51 = vadd.f32 %v1220_v26, %v1156_v41  ;;  %v1101_v3 = vadd.f32 %v1085_v43, %v2488_v55  ;;  %v1599_v49 = vadd.f32 %v1586_v50, %v1571_v56  ;;  %v1547_v13 = vmul.f32 2.0, %v2163_v7 }
  0x7e   : > { %v1644_v40 = vrot.slane %v1598_v44, 4  ;;  %v1647_v37 = vrot.slane %v1600_v63, 4  ;;  %v1559_v21 = vrot.slane %v1545_v24, 1  ;;  %v1560_v45 = vrot.slane %v1546_v39, 1 }
  0x7f   : > { %2007 = vmatprep.mubr.msk.f32.mxu0 %vm1280_vm7, %v1268_v51  ;;  %v1157_v4 = vadd.f32 %v1133_v33, %v1101_v3  ;;  %v1645_v53 = vrot.slane %v1599_v49, 4  ;;  %v1562_v17 = vrot.slane %v1547_v13, 1  ;;  %v1587_v25 = vrot.slane %v2157_v5, 2 }
  0x80   : > { %v1561_v54 = vsel %vm393_vm0, %v1559_v21, %v1560_v45  ;;  %v1588_v57 = vrot.slane %v2160_v6, 2  ;;  %v1590_v55 = vrot.slane %v2163_v7, 2  ;;  %v2564_v58 = vmul.f32 %v2464_v32, %v2464_v32 }
  0x81   : > { %v1269_v15 = vadd.f32 %v1222_v27, %v1157_v4  ;;  %v1646_v12 = vsel %vm756_vm3, %v1644_v40, %v1645_v53  ;;  %v1648_v38 = vsel %vm756_vm3, %v1645_v53, %v1647_v37  ;;  %v1563_v60 = vsel %vm393_vm0, %v1560_v45, %v1562_v17 }
  0x82   : > { %v1658_v61 = vpack.c.bf16 %v1648_v38, %v1646_v12  ;;  %v1573_v14 = vadd.f32 %v1561_v54, %v2157_v5  ;;  %v1574_v62 = vadd.f32 %v1563_v60, %v2160_v6  ;;  %v1575_v20 = vadd.f32 %v1562_v17, %v2163_v7 }
  0x83   : > { %2008 = vmatmul.mubr.msk.f32.gmra.mxu0 %vm1280_vm7, %v1269_v15  ;;  %v1589_v0 = vsel %vm514_vm1, %v1587_v25, %v1588_v57  ;;  %v1591_v26 = vsel %vm514_vm1, %v1588_v57, %v1590_v55  ;;  %v335_v18 = vmul.f32 0.0010283801, %v2173_v10  ;;  %v2577_v30 = vmul.f32 0.0010283801, %v2177_v11 }
  0x84   : > { %2027 = vmatprep.mubr.msk.bf16.mxu1 %vm1280_vm7, %v1658_v61  ;;  %v1601_v8 = vadd.f32 %v1589_v0, %v1573_v14  ;;  %v1602_v19 = vadd.f32 %v1591_v26, %v1574_v62  ;;  %v1603_v5 = vadd.f32 %v1590_v55, %v1575_v20  ;;  %v354_v6 = vmul.f32 0.007598758, %v2173_v10 }
  0x85   : > { %v355_v7 = vmul.f32 0.007598758, %v2177_v11  ;;  %v2583_v59 = vmul.f32 0.007598758, %v2564_v58  ;;  %v475_v2 = vmul.f32 0.036000773, %v2173_v10  ;;  %v2588_v48 = vmul.f32 %v2520_v34, %v2520_v34 }
  0x86   : > { %v1649_v31 = vrot.slane %v1601_v8, 4  ;;  %v1650_v33 = vrot.slane %v1602_v19, 4  ;;  %v1652_v36 = vrot.slane %v1603_v5, 4  ;;  %v409_v27 = vrot.slane %v354_v6, 1 }
  0x87   : > { %v410_v1 = vrot.slane %v355_v7, 1  ;;  %v412_v22 = vrot.slane %v2583_v59, 1  ;;  %v2592_v23 = vmul.f32 0.036000773, %v2177_v11  ;;  %v2595_v16 = vmul.f32 0.036000773, %v2564_v58 }
  0x88   : > { %v1651_v35 = vsel %vm756_vm3, %v1649_v31, %v1650_v33  ;;  %v1653_v28 = vsel %vm756_vm3, %v1650_v33, %v1652_v36  ;;  %v530_v9 = vrot.slane %v475_v2, 2  ;;  %v596_v29 = vmul.f32 0.10936069, %v2173_v10 }
  0x89   : > { %v1659_v47 = vpack.c.bf16 %v1653_v28, %v1651_v35  ;;  %v411_v52 = vsel %vm393_vm0, %v409_v27, %v410_v1  ;;  %v2604_v42 = vsel %vm393_vm0, %v410_v1, %v412_v22  ;;  %v531_v41 = vrot.slane %v2592_v23, 2 }
  0x8a   : > { %v456_v43 = vadd.f32 %v411_v52, %v335_v18  ;;  %v457_v56 = vadd.f32 %v2604_v42, %v2577_v30  ;;  %v533_v50 = vrot.slane %v2595_v16, 2  ;;  %v597_v44 = vmul.f32 0.10936069, %v2177_v11 }
  0x8b   : > { %2028 = vmatmul.mubr.msk.bf16.vlgmr.msra.gmra.mxu1 %vm1280_vm7, %v1659_v47  ;;  %v532_v63 = vsel %vm514_vm1, %v530_v9, %v531_v41  ;;  %v598_v24 = vmul.f32 0.10936069, %v2564_v58  ;;  %v651_v39 = vrot.slane %v596_v29, 3  ;;  %v717_v51 = vmul.f32 0.21300554, %v2173_v10  ;;  %v2637_v9 = vld [vmem:[%s2137_s8] sm:$0xff] }
  0x8c   : > { %v534_v3 = vsel %vm514_vm1, %v531_v41, %v533_v50  ;;  %v577_v49 = vadd.f32 %v532_v63, %v456_v43  ;;  %v652_v13 = vrot.slane %v597_v44, 3  ;;  %v718_v40 = vmul.f32 0.21300554, %v2177_v11  ;;  %2032 = vmatpush3.bf16.msra.mxu1 %v2377_v46 }
  0x8d   : > { %v578_v37 = vadd.f32 %v534_v3, %v457_v56  ;;  %v654_v21 = vrot.slane %v598_v24, 3  ;;  %v719_v45 = vmul.f32 0.21300554, %v2564_v58  ;;  %v772_v4 = vrot.slane %v717_v51, 4 }
  0x8e   : > { %v653_v53 = vsel %vm635_vm2, %v651_v39, %v652_v13  ;;  %v773_v17 = vrot.slane %v718_v40, 4  ;;  %v838_v25 = vmul.f32 0.26601171, %v2173_v10  ;;  %v839_v54 = vmul.f32 0.26601171, %v2177_v11 }
  0x8f   : > { %v655_v57 = vsel %vm635_vm2, %v652_v13, %v654_v21  ;;  %v698_v55 = vadd.f32 %v653_v53, %v577_v49  ;;  %v775_v15 = vrot.slane %v719_v45, 4  ;;  %v966_v12 = vrot.slane %v717_v51, 6 }
  0x90   : > { %v699_v38 = vadd.f32 %v655_v57, %v578_v37  ;;  %v774_v46 = vsel %vm756_vm3, %v772_v4, %v773_v17  ;;  %v893_v60 = vrot.slane %v838_v25, 5  ;;  %v894_v61 = vrot.slane %v839_v54, 5 }
  0x91   : > { %v776_v14 = vsel %vm756_vm3, %v773_v17, %v775_v15  ;;  %v819_v62 = vadd.f32 %v774_v46, %v698_v55  ;;  %v967_v20 = vrot.slane %v718_v40, 6  ;;  %v1039_v0 = vrot.slane %v596_v29, 7  ;;  %v2060_v29 = vld [vmem:[%s2148_s14] sm:$0xff] }
  0x92   : > { %v820_v26 = vadd.f32 %v776_v14, %v699_v38  ;;  %v895_v10 = vsel %vm877_vm4, %v893_v60, %v894_v61  ;;  %v1040_v18 = vrot.slane %v597_v44, 7  ;;  %v1174_v11 = vmul.f32 0.0010283801, %v2564_v58  ;;  %v2643_v44 = vld [vmem:[%s2137_s8 + $0x8] sm:$0xff] }
  0x93   : > { %v940_v8 = vadd.f32 %v895_v10, %v819_v62  ;;  %v968_v19 = vsel %vm950_vm5, %v966_v12, %v967_v20  ;;  %v1223_v5 = vrot.slane %v2577_v30, 2  ;;  %v840_v6 = vmul.f32 0.26601171, %v2564_v58 }
  0x94   : > { %v1041_v7 = vsel %vm1023_vm6, %v1039_v0, %v1040_v18  ;;  %v1224_v2 = vrot.slane %v1174_v11, 2  ;;  %v969_v31 = vrot.slane %v719_v45, 6  ;;  %v1042_v33 = vrot.slane %v598_v24, 7  ;;  %v2063_v24 = vld [vmem:[%s2148_s14 + $0x10] sm:$0xff] }
  0x95   : > { %v1013_v36 = vadd.f32 %v968_v19, %v940_v8  ;;  %v896_v27 = vrot.slane %v840_v6, 5  ;;  %v1115_v1 = vmul.f32 0.007598758, %v2588_v48  ;;  %v1175_v35 = vmul.f32 0.0010283801, %v2588_v48  ;;  %v2062_v48 = vld [vmem:[%s2148_s14 + $0x8] sm:$0xff] }
  0x96   : > { %v1225_v28 = vsel %vm514_vm1, %v1223_v5, %v1224_v2  ;;  %v970_v30 = vsel %vm950_vm5, %v967_v20, %v969_v31  ;;  %v1043_v58 = vsel %vm1023_vm6, %v1040_v18, %v1042_v33  ;;  %v317_v47 = vmul.f32 %v2060_v29, %v2637_v9 }
  0x97   : > { %v1086_v52 = vadd.f32 %v1041_v7, %v1013_v36  ;;  %v897_v41 = vsel %vm877_vm4, %v894_v61, %v896_v27  ;;  %v1134_v43 = vrot.slane %v1115_v1, 1  ;;  %v1226_v56 = vrot.slane %v1175_v35, 2 }
  0x98   : > { %v941_v50 = vadd.f32 %v897_v41, %v820_v26  ;;  %v318_v63 = vmul.f32 %v2062_v48, %v2643_v44  ;;  %v2649_v39 = vmul.f32 %v2063_v24, %v2464_v32  ;;  %v337_v51 = vmul.f32 0.0010283801, %v317_v47 }
  0x99   : > { %v1102_v3 = vadd.f32 %v1086_v52, %v2592_v23  ;;  %v1135_v49 = vsel %vm393_vm0, %v412_v22, %v1134_v43  ;;  %v1227_v13 = vsel %vm514_vm1, %v1224_v2, %v1226_v56  ;;  %v357_v40 = vmul.f32 0.007598758, %v317_v47 }
  0x9a   : > { %v1014_v37 = vadd.f32 %v970_v30, %v941_v50  ;;  %v2656_v21 = vmul.f32 0.0010283801, %v318_v63  ;;  %v358_v45 = vmul.f32 0.007598758, %v318_v63  ;;  %v2659_v4 = vmul.f32 0.007598758, %v2649_v39 }
  0x9b   : > { %v1158_v53 = vadd.f32 %v1102_v3, %v2604_v42  ;;  %v414_v17 = vrot.slane %v357_v40, 1  ;;  %v478_v25 = vmul.f32 0.036000773, %v317_v47  ;;  %v2662_v54 = vmul.f32 0.036000773, %v318_v63 }
  0x9c   : > { %v1087_v23 = vadd.f32 %v1043_v58, %v1014_v37  ;;  %v415_v59 = vrot.slane %v358_v45, 1  ;;  %v417_v22 = vrot.slane %v2659_v4, 1  ;;  %v2666_v57 = vmul.f32 0.036000773, %v2649_v39  ;;  %v2064_v37 = vld [vmem:[%s2148_s14 + $0x18] sm:$0x3] }
  0x9d   : > { %v1270_v55 = vadd.f32 %v1225_v28, %v1158_v53  ;;  %v535_v15 = vrot.slane %v478_v25, 2  ;;  %v536_v12 = vrot.slane %v2662_v54, 2  ;;  %v599_v38 = vmul.f32 0.10936069, %v317_v47 }
  0x9e   : > { %v1103_v46 = vadd.f32 %v1087_v23, %v2595_v16  ;;  %v416_v42 = vsel %vm393_vm0, %v414_v17, %v415_v59  ;;  %v2674_v60 = vsel %vm393_vm0, %v415_v59, %v417_v22  ;;  %v538_v61 = vrot.slane %v2666_v57, 2 }
  0x9f   : > { %2010 = vmatprep.mubr.msk.f32.mxu0 %vm1280_vm7, %v1270_v55  ;;  %v458_v14 = vadd.f32 %v416_v42, %v337_v51  ;;  %v459_v62 = vadd.f32 %v2674_v60, %v2656_v21  ;;  %v537_v20 = vsel %vm514_vm1, %v535_v15, %v536_v12  ;;  %v600_v0 = vmul.f32 0.10936069, %v318_v63 }
  0xa0   : > { %v1159_v26 = vadd.f32 %v1135_v49, %v1103_v46  ;;  %v539_v16 = vsel %vm514_vm1, %v536_v12, %v538_v61  ;;  %v601_v10 = vmul.f32 0.10936069, %v2649_v39  ;;  %v656_v18 = vrot.slane %v599_v38, 3 }
  0xa1   : > { %v579_v11 = vadd.f32 %v537_v20, %v458_v14  ;;  %v580_v8 = vadd.f32 %v539_v16, %v459_v62  ;;  %v657_v19 = vrot.slane %v600_v0, 3  ;;  %v720_v5 = vmul.f32 0.21300554, %v317_v47 }
  0xa2   : > { %v1271_v6 = vadd.f32 %v1227_v13, %v1159_v26  ;;  %v659_v7 = vrot.slane %v601_v10, 3  ;;  %v721_v2 = vmul.f32 0.21300554, %v318_v63  ;;  %v722_v31 = vmul.f32 0.21300554, %v2649_v39 }
  0xa3   : > { %v658_v33 = vsel %vm635_vm2, %v656_v18, %v657_v19  ;;  %v777_v36 = vrot.slane %v720_v5, 4  ;;  %v841_v27 = vmul.f32 0.26601171, %v317_v47  ;;  %v842_v1 = vmul.f32 0.26601171, %v318_v63 }
  0xa4   : > { %2011 = vmatmul.mubr.msk.f32.gmra.mxu0 %vm1280_vm7, %v1271_v6  ;;  %v660_v35 = vsel %vm635_vm2, %v657_v19, %v659_v7  ;;  %v700_v28 = vadd.f32 %v658_v33, %v579_v11  ;;  %v778_v30 = vrot.slane %v721_v2, 4  ;;  %v780_v58 = vrot.slane %v722_v31, 4  ;;  %v2710_v6 = vld [vmem:[%s2142_s11] sm:$0xff] }
  0xa5   : > { %v701_v29 = vadd.f32 %v660_v35, %v580_v8  ;;  %v898_v52 = vrot.slane %v841_v27, 5  ;;  %v899_v41 = vrot.slane %v842_v1, 5  ;;  %v971_v43 = vrot.slane %v720_v5, 6 }
  0xa6   : > { %v779_v56 = vsel %vm756_vm3, %v777_v36, %v778_v30  ;;  %v781_v50 = vsel %vm756_vm3, %v778_v30, %v780_v58  ;;  %v972_v48 = vrot.slane %v721_v2, 6  ;;  %v1044_v24 = vrot.slane %v599_v38, 7  ;;  %v2718_v36 = vld [vmem:[%s2142_s11 + $0x10] sm:$0xff] }
  0xa7   : > { %v821_v47 = vadd.f32 %v779_v56, %v700_v28  ;;  %v822_v63 = vadd.f32 %v781_v50, %v701_v29  ;;  %v900_v51 = vsel %vm877_vm4, %v898_v52, %v899_v41  ;;  %v1045_v3 = vrot.slane %v600_v0, 7 }
  0xa8   : > { %v973_v49 = vsel %vm950_vm5, %v971_v43, %v972_v48  ;;  %v1176_v13 = vmul.f32 0.0010283801, %v2649_v39  ;;  %v1228_v40 = vrot.slane %v2656_v21, 2  ;;  %v320_v45 = vmul.f32 %v2064_v37, %v2520_v34 }
  0xa9   : > { %v942_v53 = vadd.f32 %v900_v51, %v821_v47  ;;  %v1046_v17 = vsel %vm1023_vm6, %v1044_v24, %v1045_v3  ;;  %v843_v25 = vmul.f32 0.26601171, %v2649_v39  ;;  %v974_v23 = vrot.slane %v722_v31, 6  ;;  %v2714_v31 = vld [vmem:[%s2142_s11 + $0x8] sm:$0xff] }
  0xaa   : > { %v1229_v59 = vrot.slane %v1176_v13, 2  ;;  %v1047_v55 = vrot.slane %v601_v10, 7  ;;  %v1116_v15 = vmul.f32 0.007598758, %v320_v45  ;;  %v1177_v12 = vmul.f32 0.0010283801, %v320_v45 }
  0xab   : > { %v1015_v38 = vadd.f32 %v973_v49, %v942_v53  ;;  %v901_v46 = vrot.slane %v843_v25, 5  ;;  %v975_v42 = vsel %vm950_vm5, %v972_v48, %v974_v23  ;;  %v1604_v61 = vmul.f32 -1.0, %v2637_v9 }
  0xac   : > { %v1230_v21 = vsel %vm514_vm1, %v1228_v40, %v1229_v59  ;;  %v1048_v34 = vsel %vm1023_vm6, %v1045_v3, %v1047_v55  ;;  %v1136_v14 = vrot.slane %v1116_v15, 1  ;;  %v1231_v62 = vrot.slane %v1177_v12, 2 }
  0xad   : > { %v1088_v39 = vadd.f32 %v1046_v17, %v1015_v38  ;;  %v902_v20 = vsel %vm877_vm4, %v899_v41, %v901_v46  ;;  %v1605_v0 = vmul.f32 -1.0, %v2643_v44  ;;  %v1606_v26 = vmul.f32 -1.0, %v2464_v32 }
  0xae   : > { %v943_v16 = vadd.f32 %v902_v20, %v822_v63  ;;  %v1137_v10 = vsel %vm393_vm0, %v417_v22, %v1136_v14  ;;  %v1232_v18 = vsel %vm514_vm1, %v1229_v59, %v1231_v62  ;;  %v1616_v11 = vrot.slane %v1604_v61, 2 }
  0xaf   : > { %v1104_v8 = vadd.f32 %v1088_v39, %v2662_v54  ;;  %v1617_v19 = vrot.slane %v1605_v0, 2  ;;  %v1619_v5 = vrot.slane %v1606_v26, 2  ;;  %v1607_v7 = vmul.f32 -1.0, %v2710_v6 }
  0xb0   : > { %v1016_v2 = vadd.f32 %v975_v42, %v943_v16  ;;  %v1608_v33 = vmul.f32 -1.0, %v2714_v31  ;;  %v1609_v4 = vmul.f32 -1.0, %v2718_v36  ;;  %v339_v22 = vmul.f32 0.0010283801, %v2710_v6 }
  0xb1   : > { %v1160_v27 = vadd.f32 %v1104_v8, %v2674_v60  ;;  %v1618_v54 = vsel %vm514_vm1, %v1616_v11, %v1617_v19  ;;  %v1620_v1 = vsel %vm514_vm1, %v1617_v19, %v1619_v5  ;;  %v1634_v35 = vadd.f32 %v1619_v5, %v2464_v32 }
  0xb2   : > { %v1089_v28 = vadd.f32 %v1048_v34, %v1016_v2  ;;  %v1632_v30 = vadd.f32 %v2637_v9, %v1618_v54  ;;  %v1633_v58 = vadd.f32 %v2643_v44, %v1620_v1  ;;  %v1621_v29 = vrot.slane %v1607_v7, 2 }
  0xb3   : > { %v1272_v52 = vadd.f32 %v1230_v21, %v1160_v27  ;;  %v1730_v41 = vrot.slane %v1634_v35, 4  ;;  %v1622_v43 = vrot.slane %v1608_v33, 2  ;;  %v1624_v56 = vrot.slane %v1609_v4, 2 }
  0xb4   : > { %v1105_v50 = vadd.f32 %v1089_v28, %v2666_v57  ;;  %v1727_v48 = vrot.slane %v1632_v30, 4  ;;  %v1728_v60 = vrot.slane %v1633_v58, 4  ;;  %v2730_v24 = vmul.f32 0.0010283801, %v2714_v31 }
  0xb5   : > { %2013 = vmatprep.mubr.msk.f32.mxu0 %vm1280_vm7, %v1272_v52  ;;  %v1623_v32 = vsel %vm514_vm1, %v1621_v29, %v1622_v43  ;;  %v1625_v9 = vsel %vm514_vm1, %v1622_v43, %v1624_v56  ;;  %v1637_v44 = vadd.f32 %v2718_v36, %v1624_v56  ;;  %v360_v47 = vmul.f32 0.007598758, %v2710_v6 }
  0xb6   : > { %v1161_v63 = vadd.f32 %v1137_v10, %v1105_v50  ;;  %v1729_v51 = vsel %vm756_vm3, %v1727_v48, %v1728_v60  ;;  %v1731_v57 = vsel %vm756_vm3, %v1728_v60, %v1730_v41  ;;  %v1635_v3 = vadd.f32 %v2710_v6, %v1623_v32 }
  0xb7   : > { %v1741_v49 = vpack.c.bf16 %v1731_v57, %v1729_v51  ;;  %v1636_v13 = vadd.f32 %v2714_v31, %v1625_v9  ;;  %v1735_v40 = vrot.slane %v1637_v44, 4  ;;  %v361_v37 = vmul.f32 0.007598758, %v2714_v31 }
  0xb8   : > { %v1273_v45 = vadd.f32 %v1232_v18, %v1161_v63  ;;  %v1732_v53 = vrot.slane %v1635_v3, 4  ;;  %v2743_v17 = vmul.f32 0.007598758, %v2718_v36  ;;  %v419_v25 = vrot.slane %v360_v47, 1 }
  0xb9   : > { %2033 = vmatprep.mubr.msk.bf16.mxu1 %vm1280_vm7, %v1741_v49  ;;  %v1733_v23 = vrot.slane %v1636_v13, 4  ;;  %v420_v59 = vrot.slane %v361_v37, 1  ;;  %v481_v55 = vmul.f32 0.036000773, %v2710_v6  ;;  %v2748_v15 = vmul.f32 0.036000773, %v2714_v31 }
  0xba   : > { %2014 = vmatmul.mubr.msk.f32.gmra.mxu0 %vm1280_vm7, %v1273_v45  ;;  %v422_v12 = vrot.slane %v2743_v17, 1  ;;  %v2753_v38 = vmul.f32 0.036000773, %v2718_v36  ;;  %v602_v46 = vmul.f32 0.10936069, %v2710_v6 }
  0xbb   : > { %v1734_v42 = vsel %vm756_vm3, %v1732_v53, %v1733_v23  ;;  %v1736_v61 = vsel %vm756_vm3, %v1733_v23, %v1735_v40  ;;  %v421_v21 = vsel %vm393_vm0, %v419_v25, %v420_v59  ;;  %v540_v34 = vrot.slane %v481_v55, 2  ;;  %v2068_v45 = vld [vmem:[%s2142_s11 + $0x18] sm:$0x3] }
  0xbc   : > { %v1742_v14 = vpack.c.bf16 %v1736_v61, %v1734_v42  ;;  %v423_v62 = vsel %vm393_vm0, %v420_v59, %v422_v12  ;;  %v460_v39 = vadd.f32 %v421_v21, %v339_v22  ;;  %v541_v20 = vrot.slane %v2748_v15, 2 }
  0xbd   : > { %v461_v0 = vadd.f32 %v423_v62, %v2730_v24  ;;  %v543_v26 = vrot.slane %v2753_v38, 2  ;;  %v603_v16 = vmul.f32 0.10936069, %v2714_v31  ;;  %v604_v10 = vmul.f32 0.10936069, %v2718_v36 }
  0xbe   : > { %2034 = vmatmul.mubr.msk.bf16.vlgmr.msra.gmra.mxu1 %vm1280_vm7, %v1742_v14  ;;  %v542_v18 = vsel %vm514_vm1, %v540_v34, %v541_v20  ;;  %v661_v11 = vrot.slane %v602_v46, 3  ;;  %v723_v8 = vmul.f32 0.21300554, %v2710_v6  ;;  %v724_v19 = vmul.f32 0.21300554, %v2714_v31 }
  0xbf   : > { %v544_v5 = vsel %vm514_vm1, %v541_v20, %v543_v26  ;;  %v581_v7 = vadd.f32 %v542_v18, %v460_v39  ;;  %v662_v2 = vrot.slane %v603_v16, 3  ;;  %v664_v33 = vrot.slane %v604_v10, 3 }
  0xc0   : > { %v582_v4 = vadd.f32 %v544_v5, %v461_v0  ;;  %v725_v22 = vmul.f32 0.21300554, %v2718_v36  ;;  %v782_v27 = vrot.slane %v723_v8, 4  ;;  %v783_v54 = vrot.slane %v724_v19, 4 }
  0xc1   : > { %v663_v1 = vsel %vm635_vm2, %v661_v11, %v662_v2  ;;  %v665_v35 = vsel %vm635_vm2, %v662_v2, %v664_v33  ;;  %v844_v28 = vmul.f32 0.26601171, %v2710_v6  ;;  %v845_v30 = vmul.f32 0.26601171, %v2714_v31 }
  0xc2   : > { %v702_v58 = vadd.f32 %v663_v1, %v581_v7  ;;  %v703_v29 = vadd.f32 %v665_v35, %v582_v4  ;;  %v784_v52 = vsel %vm756_vm3, %v782_v27, %v783_v54  ;;  %v785_v41 = vrot.slane %v725_v22, 4 }
  0xc3   : > { %v903_v43 = vrot.slane %v844_v28, 5  ;;  %v904_v56 = vrot.slane %v845_v30, 5  ;;  %v976_v50 = vrot.slane %v723_v8, 6  ;;  %v977_v48 = vrot.slane %v724_v19, 6 }
  0xc4   : > { %v786_v60 = vsel %vm756_vm3, %v783_v54, %v785_v41  ;;  %v823_v32 = vadd.f32 %v784_v52, %v702_v58  ;;  %v1049_v9 = vrot.slane %v602_v46, 7  ;;  %v1050_v44 = vrot.slane %v603_v16, 7 }
  0xc5   : > { %v905_v47 = vsel %vm877_vm4, %v903_v43, %v904_v56  ;;  %v978_v6 = vsel %vm950_vm5, %v976_v50, %v977_v48  ;;  %v1178_v31 = vmul.f32 0.0010283801, %v2718_v36  ;;  %v846_v51 = vmul.f32 0.26601171, %v2718_v36 }
  0xc6   : > { %v944_v63 = vadd.f32 %v905_v47, %v823_v32  ;;  %v979_v57 = vrot.slane %v725_v22, 6  ;;  %v824_v3 = vadd.f32 %v786_v60, %v703_v29  ;;  %v1051_v49 = vsel %vm1023_vm6, %v1049_v9, %v1050_v44 }
  0xc7   : > { %v906_v40 = vrot.slane %v846_v51, 5  ;;  %v1052_v37 = vrot.slane %v604_v10, 7  ;;  %v1117_v53 = vmul.f32 0.007598758, %v2068_v45  ;;  %v1233_v25 = vrot.slane %v2730_v24, 2 }
  0xc8   : > { %v1017_v13 = vadd.f32 %v978_v6, %v944_v63  ;;  %v1234_v23 = vrot.slane %v1178_v31, 2  ;;  %v980_v46 = vsel %vm950_vm5, %v977_v48, %v979_v57  ;;  %v1179_v42 = vmul.f32 0.0010283801, %v2068_v45 }
  0xc9   : > { %v907_v55 = vsel %vm877_vm4, %v904_v56, %v906_v40  ;;  %v1053_v21 = vsel %vm1023_vm6, %v1050_v44, %v1052_v37  ;;  %v1138_v34 = vrot.slane %v1117_v53, 1 }
  0xca   : > { %v1090_v59 = vadd.f32 %v1051_v49, %v1017_v13  ;;  %v945_v61 = vadd.f32 %v907_v55, %v824_v3  ;;  %v1235_v14 = vsel %vm514_vm1, %v1233_v25, %v1234_v23  ;;  %v1236_v0 = vrot.slane %v1179_v42, 2 }
  0xcb   : > { %v1139_v16 = vsel %vm393_vm0, %v422_v12, %v1138_v34 }
  0xcc   : > { %v1106_v36 = vadd.f32 %v1090_v59, %v2748_v15  ;;  %v1018_v39 = vadd.f32 %v980_v46, %v945_v61  ;;  %v1237_v15 = vsel %vm514_vm1, %v1234_v23, %v1236_v0 }
  0xce   : > { %v1162_v20 = vadd.f32 %v1106_v36, %v423_v62  ;;  %v1091_v26 = vadd.f32 %v1053_v21, %v1018_v39 }
  0xd0   : > { %v1274_v24 = vadd.f32 %v1235_v14, %v1162_v20  ;;  %v1107_v10 = vadd.f32 %v1091_v26, %v2753_v38 }
  0xd2   : > { %2016 = vmatprep.mubr.msk.f32.mxu0 %vm1280_vm7, %v1274_v24  ;;  %v1163_v18 = vadd.f32 %v1139_v16, %v1107_v10 }
  0xd4   : > { %v1275_v11 = vadd.f32 %v1237_v15, %v1163_v18 }
  0xd6   : > { %2017 = vmatmul.mubr.msk.f32.gmra.mxu0 %vm1280_vm7, %v1275_v11 }
  0xed   : > { %v2798_v8 = vpop.f32.mrf.mxu0 }
  0xee   : > { %v2808_v38 = vmul.f32 %v2798_v8, %v2798_v8 }
  0xef   : > { %v2800_v62 = vpop.f32.mrf.mxu0 }
  0xf0   : > { %v2812_v22 = vmul.f32 %v2800_v62, %v2800_v62 }
 0x101   : > { %v2802_v17 = vpop.f32.mrf.mxu1 }
 0x103   : > { %v2804_v2 = vpop.f32.mrf.mxu1 }
 0x11a   : > { %v2006_v19 = vpop.f32.mrf.mxu0 }
 0x11b   : > { %v2815_v27 = vsub.f32 %v2006_v19, %v2808_v38 }
 0x11c   : > { %v1405_v5 = vpop.f32.mrf.mxu0 }
 0x11d   : > { %v2820_v30 = vsub.f32 %v1405_v5, %v2812_v22 }
 0x12f   : > { %v2817_v35 = vpop.f32.mrf.mxu1 }
 0x131   : > { %v2825_v43 = vpop.f32.mrf.mxu1 }
 0x143   : > { %v2009_v7 = vpop.f32.mrf.mxu0 }
 0x144   : > { %v1479_v33 = vmul.f32 %v2009_v7, %v2009_v7  ;;  %v1481_v31 = vmul.f32 %v2009_v7, %v2798_v8 }
 0x145   : > { %v1415_v12 = vpop.f32.mrf.mxu0 }
 0x146   : > { %v1478_v54 = vmul.f32 %v1415_v12, %v1415_v12  ;;  %v1497_v52 = vadd.f32 %v1479_v33, %v2808_v38  ;;  %v1480_v51 = vmul.f32 %v1415_v12, %v2800_v62  ;;  %v1487_v57 = vmul.f32 2.0, %v1481_v31 }
 0x148   : > { %v1496_v56 = vadd.f32 %v1478_v54, %v2812_v22  ;;  %v1499_v48 = vadd.f32 0.0001, %v1497_v52  ;;  %v1486_v37 = vmul.f32 2.0, %v1480_v51  ;;  %v1489_v25 = vadd.f32 0.0001, %v1487_v57 }
 0x14a   : > { %v1498_v9 = vadd.f32 0.0001, %v1496_v56  ;;  %v1488_v34 = vadd.f32 0.0001, %v1486_v37 }
 0x14b   : > { %v2029_v32 = vpop.f32.mrf.mxu1 }
 0x14c   : > { %v1806_v23 = vand.u32 2147483647, %v2029_v32 }
 0x14d   : > { %v1706_v6 = vpop.f32.mrf.mxu1 }
 0x14e   : > { %v1804_v59 = vand.u32 2147483647, %v1706_v6 }
 0x14f   : > { %v2030_v63 = vpop.f32.mrf.mxu1 }
 0x150   : > { %v1807_v26 = vand.u32 2147483647, %v2030_v63 }
 0x151   : > { %v1709_v49 = vpop.f32.mrf.mxu1 }
 0x152   : > { %v1805_v15 = vand.u32 2147483647, %v1709_v49 }
 0x164   : > { %v2012_v4 = vpop.f32.mrf.mxu0 }
 0x165   : > { %v1483_v1 = vsub.f32 %v2012_v4, %v1479_v33 }
 0x166   : > { %v1425_v28 = vpop.f32.mrf.mxu0 }
 0x167   : > { %v1501_v58 = vadd.f32 %v1483_v1, %v2815_v27  ;;  %v1482_v29 = vsub.f32 %v1425_v28, %v1478_v54 }
 0x169   : > { %v1500_v41 = vadd.f32 %v1482_v29, %v2820_v30  ;;  %v1503_v50 = vadd.f32 0.0009, %v1501_v58 }
 0x16b   : > { %v1502_v60 = vadd.f32 0.0009, %v1500_v41  ;;  %v1505_v44 = vmul.f32 %v1503_v50, %v1499_v48 }
 0x16d   : > { %v1504_v47 = vmul.f32 %v1502_v60, %v1498_v9  ;;  %2051 = vrcp.f32 %v1505_v44 }
 0x16f   : > { %2053 = vrcp.f32 %v1504_v47 }
 0x17a   : > { %v2015_v3 = vpop.f32.mrf.mxu0  ;;  %v2052_v36 = vpop.eup %2051 }
 0x17b   : > { %v1485_v13 = vsub.f32 %v2015_v3, %v1481_v31 }
 0x17c   : > { %v1435_v40 = vpop.f32.mrf.mxu0  ;;  %v2054_v0 = vpop.eup %2053 }
 0x17d   : > { %v1491_v45 = vmul.f32 2.0, %v1485_v13  ;;  %v1484_v53 = vsub.f32 %v1435_v40, %v1480_v51 }
 0x17e   : > { %v2035_v55 = vpop.f32.mrf.mxu1 }
 0x17f   : > { %v1493_v46 = vadd.f32 0.0009, %v1491_v45  ;;  %v1490_v42 = vmul.f32 2.0, %v1484_v53  ;;  %v1810_v61 = vand.u32 2147483647, %v2035_v55 }
 0x180   : > { %v1789_v21 = vpop.f32.mrf.mxu1 }
 0x181   : > { %v1495_v14 = vmul.f32 %v1493_v46, %v1489_v25  ;;  %v1492_v39 = vadd.f32 0.0009, %v1490_v42  ;;  %v1808_v20 = vand.u32 2147483647, %v1789_v21  ;;  %v1814_v24 = vadd.f32 %v1810_v61, %v1806_v23 }
 0x182   : > { %v2036_v16 = vpop.f32.mrf.mxu1 }
 0x183   : > { %v1509_v10 = vmul.f32 %v2052_v36, %v1495_v14  ;;  %v1494_v18 = vmul.f32 %v1492_v39, %v1488_v34  ;;  %v1812_v11 = vadd.f32 %v1808_v20, %v1804_v59  ;;  %v1811_v19 = vand.u32 2147483647, %v2036_v16 }
 0x184   : > { %v1792_v5 = vpop.f32.mrf.mxu1  ;;  %v1827_v33 = vsel %vm1280_vm7, %v1814_v24, 0.0 }
 0x185   : > { %v1507_v7 = vmul.f32 %v2054_v0, %v1494_v18  ;;  %v1809_v12 = vand.u32 2147483647, %v1792_v5  ;;  %v1815_v4 = vadd.f32 %v1811_v19, %v1807_v26  ;;  %v1838_v54 = vsel %vm1280_vm7, %v1509_v10, 0.0 }
 0x186   : > { %v1816_v28 = vsel %vm1280_vm7, %v1812_v11, 0.0 }
 0x187   : > { %v1837_v1 = vsel %vm1280_vm7, %v1507_v7, 0.0  ;;  %v1813_v58 = vadd.f32 %v1809_v12, %v1805_v15  ;;  %v1828_v52 = vsel %vm1280_vm7, %v1815_v4, 0.0 }
 0x188   : > { %v1839_v29 = vadd.f32 %v1838_v54, %v1837_v1  ;;  %v1829_v41 = vadd.f32 %v1828_v52, %v1827_v33 }
 0x189   : > { %v1817_v56 = vsel %vm1280_vm7, %v1813_v58, 0.0 }
 0x18a   : > { %v1840_v50 = vrot.slane %v1839_v29, 4  ;;  %v1818_v48 = vadd.f32 %v1817_v56, %v1816_v28  ;;  %v1830_v60 = vrot.slane %v1829_v41, 4 }
 0x18c   : > { %v1841_v32 = vadd.f32 %v1840_v50, %v1839_v29  ;;  %v1819_v9 = vrot.slane %v1818_v48, 4  ;;  %v1831_v44 = vadd.f32 %v1830_v60, %v1829_v41 }
 0x18e   : > { %v1842_v47 = vrot.slane %v1841_v32, 2  ;;  %v1820_v6 = vadd.f32 %v1819_v9, %v1818_v48  ;;  %v1832_v31 = vrot.slane %v1831_v44, 2 }
 0x190   : > { %v1843_v63 = vadd.f32 %v1842_v47, %v1841_v32  ;;  %v1821_v51 = vrot.slane %v1820_v6, 2  ;;  %v1833_v57 = vadd.f32 %v1832_v31, %v1831_v44 }
 0x192   : > { %v1844_v3 = vrot.slane %v1843_v63, 1  ;;  %v1822_v49 = vadd.f32 %v1821_v51, %v1820_v6  ;;  %v1834_v13 = vrot.slane %v1833_v57, 1 }
 0x194   : > { %v1845_v40 = vadd.f32 %v1844_v3, %v1843_v63  ;;  %v1823_v37 = vrot.slane %v1822_v49, 1  ;;  %v1835_v45 = vadd.f32 %v1834_v13, %v1833_v57 }
 0x196   : > { %1846 = vst.msk [vmem:[%s2840_s20 + $0x2] sm:$0x1] %vm1825_vm8, %v1845_v40  ;;  %v1824_v53 = vadd.f32 %v1823_v37, %v1822_v49  ;;  %v2018_v25 = vpop.f32.mrf.mxu0  ;;  %1836 = vst.msk [vmem:[%s2840_s20 + $0x1] sm:$0x1] %vm1825_vm8, %v1835_v45 }
 0x197   : > { %v1511_v23 = vmul.f32 %v2018_v25, %v2018_v25  ;;  %v1513_v39 = vmul.f32 %v2018_v25, %v2798_v8 }
 0x198   : > { %1826 = vst.msk [vmem:[%s2840_s20] sm:$0x1] %vm1825_vm8, %v1824_v53  ;;  %v1445_v59 = vpop.f32.mrf.mxu0 }
 0x199   : > { %v1515_v55 = vsub.f32 %v2802_v17, %v1511_v23  ;;  %v1529_v46 = vadd.f32 %v1511_v23, %v2808_v38  ;;  %v1510_v42 = vmul.f32 %v1445_v59, %v1445_v59  ;;  %v1512_v26 = vmul.f32 %v1445_v59, %v2800_v62 }
 0x19a   : > { %v1517_v38 = vsub.f32 %v2817_v35, %v1513_v39 }
 0x19b   : > { %v1533_v61 = vadd.f32 %v1515_v55, %v2815_v27  ;;  %v1514_v36 = vsub.f32 %v2804_v2, %v1510_v42  ;;  %v1528_v21 = vadd.f32 %v1510_v42, %v2812_v22  ;;  %v1531_v34 = vadd.f32 0.0001, %v1529_v46 }
 0x19c   : > { %v1516_v27 = vsub.f32 %v2825_v43, %v1512_v26  ;;  %v1523_v2 = vmul.f32 2.0, %v1517_v38  ;;  %v1519_v22 = vmul.f32 2.0, %v1513_v39  ;;  %v1518_v18 = vmul.f32 2.0, %v1512_v26 }
 0x19d   : > { %v1535_v14 = vadd.f32 0.0009, %v1533_v61  ;;  %v1532_v20 = vadd.f32 %v1514_v36, %v2820_v30  ;;  %v1530_v24 = vadd.f32 0.0001, %v1528_v21 }
 0x19e   : > { %v1522_v10 = vmul.f32 2.0, %v1516_v27  ;;  %v1525_v15 = vadd.f32 0.0009, %v1523_v2  ;;  %v1521_v8 = vadd.f32 0.0001, %v1519_v22 }
 0x19f   : > { %v1537_v0 = vmul.f32 %v1535_v14, %v1531_v34  ;;  %v1534_v17 = vadd.f32 0.0009, %v1532_v20  ;;  %v1520_v62 = vadd.f32 0.0001, %v1518_v18 }
 0x1a0   : > { %v1524_v11 = vadd.f32 0.0009, %v1522_v10  ;;  %v1527_v19 = vmul.f32 %v1525_v15, %v1521_v8 }
 0x1a1   : > { %2055 = vrcp.f32 %v1537_v0  ;;  %v1536_v16 = vmul.f32 %v1534_v17, %v1530_v24 }
 0x1a2   : > { %v1526_v7 = vmul.f32 %v1524_v11, %v1520_v62 }
 0x1a3   : > { %2057 = vrcp.f32 %v1536_v16 }
 0x1ae   : > { %v2056_v30 = vpop.eup %2055 }
 0x1af   : > { %v1541_v5 = vmul.f32 %v2056_v30, %v1527_v19 }
 0x1b0   : > { %v2058_v12 = vpop.eup %2057 }
 0x1b1   : > { %v1539_v33 = vmul.f32 %v2058_v12, %v1526_v7  ;;  %v1848_v35 = vsel %vm1280_vm7, %v1541_v5, 0.0 }
 0x1b3   : > { %v1847_v43 = vsel %vm1280_vm7, %v1539_v33, 0.0 }
 0x1b4   : > { %v1849_v4 = vadd.f32 %v1848_v35, %v1847_v43 }
 0x1b6   : > { %v1850_v54 = vrot.slane %v1849_v4, 4 }
 0x1b8   : > { %v1851_v1 = vadd.f32 %v1850_v54, %v1849_v4 }
 0x1ba   : > { %v1852_v28 = vrot.slane %v1851_v1, 2 }
 0x1bc   : > { %v1853_v58 = vadd.f32 %v1852_v28, %v1851_v1 }
 0x1be   : > { %v1854_v29 = vrot.slane %v1853_v58, 1 }
 0x1c0   : > { %v1855_v52 = vadd.f32 %v1854_v29, %v1853_v58 }
 0x1c2   : > { %1856 = vst.msk [vmem:[%s2840_s20 + $0x3] sm:$0x1] %vm1825_vm8, %v1855_v52 }
 0x1c3 PF: > { %s16_s21 = sadd.s32 1, %s2075_s21  }
 0x1c4   : > { %p13_p4 = scmp.ge.s32.totalorder %s16_s21, 4  }
 0x1c6   :  { %15 = sbr.rel (!%p13_p4) target bundleno = 1 (0x1), region = 80 }

</bundles_post_ra>
